<compile_context>
chip_gen: v6e
topology: v6e:2x2x1
jax: 0.10.0
libtpu: 0.0.40
codegen_flags: <defaults>
</compile_context>

<pallas_src>
from functools import partial

import numpy as np
import jax
import jax.numpy as jnp
from jax.experimental import pallas as pl
from jax.experimental.pallas import tpu as pltpu


# ----------------------------------------------------------------------------
# Fused kernel: GCN + sum-pooling + prior + encoder + decoder_x + decoder_a.
# One grid step processes a batch tile of TB graphs.
# Weight slabs (BN already folded into W/b; dtype = f32 or bf16):
#   gcn_ref  : (F+1, H)    rows 0:F = W, row F = bias
#   prior_ref: (2, 2Z)     row 0 = [w_mean | w_var], row 1 = [b_mean | b_var]
#   enc_ref  : (H+3, 2Z)   rows 0:H rep-W [mean|var], row H u-w, row H+1 ycf-w, row H+2 bias
#   dec1_ref : (Z+2, 2H)   [x-head | a-head]: rows 0:Z z-w, row Z ycf-w, row Z+1 bias
#   d2x/d2a  : (H+1, H)    second decoder layer per head (last row = bias)
#   d3x_ref  : (H+1, N*F)  third decoder layer, feature head
#   d3a_ref  : (H+1, N*N)  third decoder layer, adjacency head
# ----------------------------------------------------------------------------
def graph_cfe_kernel(x_ref, adj_ref, u_ref, ycf_ref,
                     gcn_ref, prior_ref, enc_ref, dec1_ref,
                     d2x_ref, d2a_ref, d3x_ref, d3a_ref,
                     z_ref, feat_ref, arec_ref):
    TB, N, F = x_ref.shape
    H = gcn_ref.shape[1]
    Z = prior_ref.shape[1] // 2
    f32 = jnp.float32
    wdt = gcn_ref.dtype            # weight-slab dtype; accumulation stays float32

    # ---- DenseGCNConv + sum pooling, commuted so no NxN matmul is needed ----
    # pooled_f = sum_n (A_norm X)_{nf} = sum_m [ dis_m * (sum_n dis_n A_{nm}) ] X_{mf}
    x = x_ref[...]                                         # (TB, N, F)
    adj = adj_ref[...]                                     # (TB, N, N)
    row = jax.lax.broadcasted_iota(jnp.int32, (N, N), 0)
    col = jax.lax.broadcasted_iota(jnp.int32, (N, N), 1)
    adj = jnp.where((row == col)[None], 1.0, adj)          # add self loops: diag := 1
    deg = jnp.sum(adj, axis=-1)                            # (TB, N)
    dis = 1.0 / jnp.sqrt(jnp.maximum(deg, 1.0))            # D^{-1/2} (full-precision sqrt)
    s = jnp.sum(dis[:, :, None] * adj, axis=1)             # (TB, N): sum_n dis_n A_nm
    wgt = dis * s                                          # (TB, N)
    pooled = jnp.sum(wgt[:, :, None] * x, axis=1)          # (TB, F)
    # sum_n (A_norm X) W == pooled @ W ; the per-node GCN bias sums to N * bias.
    rep = (jnp.dot(pooled.astype(wdt), gcn_ref[:F, :],
                   preferred_element_type=f32)
           + N * gcn_ref[F:F + 1, :])                      # (TB, H)

    u = u_ref[...]                                         # (TB, 1)
    ycf = ycf_ref[...]                                     # (TB, 1)

    # ---- prior: Linear(1, Z) mean|var lane-packed -> one broadcast FMA ------
    z_u = u * prior_ref[0:1, :] + prior_ref[1:2, :]        # (TB, 2Z)

    # ---- encoder mean|var lane-packed (BN folded into W/b), ReLU ------------
    enc = (jnp.dot(rep.astype(wdt), enc_ref[:H, :], preferred_element_type=f32)
           + u * enc_ref[H:H + 1, :]
           + ycf * enc_ref[H + 1:H + 2, :]
           + enc_ref[H + 2:H + 3, :])                      # (TB, 2Z)
    enc = jnp.maximum(enc, 0.0)
    z_mu = enc[:, :Z]

    # z outputs: four static-sliced stores; sigmoid only on the var lanes.
    z_ref[:, 0 * Z:1 * Z] = z_mu
    z_ref[:, 1 * Z:2 * Z] = jax.nn.sigmoid(enc[:, Z:])
    z_ref[:, 2 * Z:3 * Z] = z_u[:, :Z]
    z_ref[:, 3 * Z:4 * Z] = jax.nn.sigmoid(z_u[:, Z:])

    # ---- decoders (z_sample == z_mu in eval; Dropout identity; BN folded) ---
    h1 = jnp.maximum(
        jnp.dot(z_mu.astype(wdt), dec1_ref[:Z, :], preferred_element_type=f32)
        + ycf * dec1_ref[Z:Z + 1, :]
        + dec1_ref[Z + 1:Z + 2, :], 0.0)                   # (TB, 2H) = [x-head | a-head]
    h2x = jnp.maximum(
        jnp.dot(h1[:, :H].astype(wdt), d2x_ref[:H, :], preferred_element_type=f32)
        + d2x_ref[H:H + 1, :], 0.0)                        # (TB, H)
    h2a = jnp.maximum(
        jnp.dot(h1[:, H:].astype(wdt), d2a_ref[:H, :], preferred_element_type=f32)
        + d2a_ref[H:H + 1, :], 0.0)                        # (TB, H)

    feat_ref[...] = (jnp.dot(h2x.astype(wdt), d3x_ref[:H, :],
                             preferred_element_type=f32)
                     + d3x_ref[H:H + 1, :]).astype(feat_ref.dtype)
    arec_ref[...] = jax.nn.sigmoid(
        jnp.dot(h2a.astype(wdt), d3a_ref[:H, :], preferred_element_type=f32)
        + d3a_ref[H:H + 1, :]).astype(arec_ref.dtype)


# ----------------------------------------------------------------------------
# Parameter prep: fold eval-mode BatchNorm into the Linear layers and pack the
# weights/biases into 8 slabs. Pass dtype=jnp.bfloat16 for the HBM-bound regime
# (the kernel keeps f32 accumulation / elementwise math).
# ----------------------------------------------------------------------------
def pack_params(p, dtype=jnp.float32):
    assert p['wpm'].shape[0] == 1, "prior MLP input dim must be 1 (broadcast formulation)"

    def fold(w, b, s, t):
        # (x @ w + b) * s + t  ==  x @ (w*s) + (b*s + t)
        return w * s, b * s + t

    gcn = jnp.concatenate([p['gcn_w'], p['gcn_b']], axis=0)                  # (F+1, H)
    prior = jnp.concatenate(
        [jnp.concatenate([p['wpm'], p['wpv']], axis=1),
         jnp.concatenate([p['bpm'], p['bpv']], axis=1)], axis=0)             # (2, 2Z)

    w_em, b_em = fold(p['w_em'], p['b_em'], p['em_s'], p['em_t'])
    w_ev, b_ev = fold(p['w_ev'], p['b_ev'], p['ev_s'], p['ev_t'])
    enc = jnp.concatenate(
        [jnp.concatenate([w_em, w_ev], axis=1),
         jnp.concatenate([b_em, b_ev], axis=1)], axis=0)                     # (H+3, 2Z)

    w_x1, b_x1 = fold(p['w_x1'], p['b_x1'], p['x1_s'], p['x1_t'])
    w_a1, b_a1 = fold(p['w_a1'], p['b_a1'], p['a1_s'], p['a1_t'])
    dec1 = jnp.concatenate(
        [jnp.concatenate([w_x1, w_a1], axis=1),
         jnp.concatenate([b_x1, b_a1], axis=1)], axis=0)                     # (Z+2, 2H)

    w_x2, b_x2 = fold(p['w_x2'], p['b_x2'], p['x2_s'], p['x2_t'])
    w_a2, b_a2 = fold(p['w_a2'], p['b_a2'], p['a2_s'], p['a2_t'])
    d2x = jnp.concatenate([w_x2, b_x2], axis=0)                              # (H+1, H)
    d2a = jnp.concatenate([w_a2, b_a2], axis=0)                              # (H+1, H)
    d3x = jnp.concatenate([p['w_x3'], p['b_x3']], axis=0)                    # (H+1, N*F)
    d3a = jnp.concatenate([p['w_a3'], p['b_a3']], axis=0)                    # (H+1, N*N)

    return tuple(s.astype(dtype) for s in (gcn, prior, enc, dec1, d2x, d2a, d3x, d3a))


def _round_up(x, m):
    return ((x + m - 1) // m) * m


# ----------------------------------------------------------------------------
# Wrapper: batch-tiled pallas_call. Data and outputs are tiled along B with tile
# `tb` (double-buffered by the Pallas pipeline); weight slabs have constant
# index_maps so they are loaded once and stay VMEM-resident across the grid.
# The batch grid axis is "parallel" -> sharded across TensorCores on v7x.
# ----------------------------------------------------------------------------
@partial(jax.jit, static_argnames=("tb",))
def graph_cfe_forward(features, u, adj, y_cf, slabs, *, tb=128):
    B, N, F = features.shape
    Z = slabs[1].shape[1] // 2
    NF, NN = N * F, N * N

    # Keep the batch tile a multiple of 8 sublanes; pad B up to a whole number of tiles.
    tb = min(_round_up(tb, 8), _round_up(B, 8))
    Bp = _round_up(B, tb)
    pad = Bp - B
    xf, aa, uu, yy = features, adj, u, y_cf
    if pad:
        xf = jnp.pad(xf, ((0, pad), (0, 0), (0, 0)))
        aa = jnp.pad(aa, ((0, pad), (0, 0), (0, 0)))
        uu = jnp.pad(uu, ((0, pad), (0, 0)))
        yy = jnp.pad(yy, ((0, pad), (0, 0)))

    data_specs = [
        pl.BlockSpec((tb, N, F), lambda i: (i, 0, 0)),
        pl.BlockSpec((tb, N, N), lambda i: (i, 0, 0)),
        pl.BlockSpec((tb, 1), lambda i: (i, 0)),
        pl.BlockSpec((tb, 1), lambda i: (i, 0)),
    ]
    # Constant block index -> slab DMA'd once, VMEM-resident for all grid steps.
    slab_specs = [pl.BlockSpec(s.shape, lambda i: (0, 0)) for s in slabs]

    z_out, feat_out, arec_out = pl.pallas_call(
        graph_cfe_kernel,
        grid=(Bp // tb,),
        out_shape=(
            jax.ShapeDtypeStruct((Bp, 4 * Z), jnp.float32),  # [z_mu|z_logvar|z_u_mu|z_u_logvar]
            jax.ShapeDtypeStruct((Bp, NF), jnp.float32),     # features_reconst (flat)
            jax.ShapeDtypeStruct((Bp, NN), jnp.float32),     # adj_reconst (flat)
        ),
        in_specs=data_specs + slab_specs,
        out_specs=(
            pl.BlockSpec((tb, 4 * Z), lambda i: (i, 0)),
            pl.BlockSpec((tb, NF), lambda i: (i, 0)),
            pl.BlockSpec((tb, NN), lambda i: (i, 0)),
        ),
        compiler_params=pltpu.CompilerParams(
            dimension_semantics=("parallel",)),
    )(xf, aa, uu, yy, *slabs)

    return {
        'z_mu': z_out[:B, 0 * Z:1 * Z],
        'z_logvar': z_out[:B, 1 * Z:2 * Z],
        'adj_permuted': adj,
        'features_permuted': features,
        'adj_reconst': arec_out[:B].reshape(B, N, N),
        'features_reconst': feat_out[:B].reshape(B, N, F),
        'z_u_mu': z_out[:B, 2 * Z:3 * Z],
        'z_u_logvar': z_out[:B, 3 * Z:4 * Z],
    }


# ----------------------------------------------------------------------------
# Deterministic parameter init (shapes per GraphCFE.__init__, disable_u=False).
# BatchNorm running stats / affine params are randomized so the BN fold is tested.
# ----------------------------------------------------------------------------
def init_params(key, x_dim, h_dim, z_dim, max_nodes):
    keys = jax.random.split(key, 40)
    ki = iter(keys)

    def lin(fan_in, fan_out):
        bound = 1.0 / np.sqrt(fan_in)
        w = jax.random.uniform(next(ki), (fan_in, fan_out), jnp.float32, -bound, bound)
        b = jax.random.uniform(next(ki), (1, fan_out), jnp.float32, -bound, bound)
        return w, b

    def bn(dim, eps=1e-5):
        k1, k2, k3, k4 = jax.random.split(next(ki), 4)
        gamma = jax.random.uniform(k1, (1, dim), jnp.float32, 0.5, 1.5)
        beta = jax.random.uniform(k2, (1, dim), jnp.float32, -0.5, 0.5)
        rmean = jax.random.normal(k3, (1, dim), jnp.float32) * 0.1
        rvar = jax.random.uniform(k4, (1, dim), jnp.float32, 0.5, 1.5)
        scale = gamma / jnp.sqrt(rvar + eps)
        shift = beta - rmean * scale
        return scale, shift

    p = {}
    p['gcn_w'], p['gcn_b'] = lin(x_dim, h_dim)
    p['wpm'], p['bpm'] = lin(1, z_dim)                    # prior_mean
    p['wpv'], p['bpv'] = lin(1, z_dim)                    # prior_var (pre-sigmoid)
    p['w_em'], p['b_em'] = lin(h_dim + 2, z_dim)          # encoder_mean
    p['em_s'], p['em_t'] = bn(z_dim)
    p['w_ev'], p['b_ev'] = lin(h_dim + 2, z_dim)          # encoder_var
    p['ev_s'], p['ev_t'] = bn(z_dim)
    p['w_x1'], p['b_x1'] = lin(z_dim + 1, h_dim)          # decoder_x
    p['x1_s'], p['x1_t'] = bn(h_dim)
    p['w_x2'], p['b_x2'] = lin(h_dim, h_dim)
    p['x2_s'], p['x2_t'] = bn(h_dim)
    p['w_x3'], p['b_x3'] = lin(h_dim, max_nodes * x_dim)
    p['w_a1'], p['b_a1'] = lin(z_dim + 1, h_dim)          # decoder_a
    p['a1_s'], p['a1_t'] = bn(h_dim)
    p['w_a2'], p['b_a2'] = lin(h_dim, h_dim)
    p['a2_s'], p['a2_t'] = bn(h_dim)
    p['w_a3'], p['b_a3'] = lin(h_dim, max_nodes * max_nodes)
    return p


# ----------------------------------------------------------------------------
# Pure-JAX reference (mirrors the PyTorch forward exactly, eval mode), using the
# UNFOLDED / UNPACKED parameters so it independently checks the BN folding, the
# pooling commutation and the slab packing.
# ----------------------------------------------------------------------------
def reference_forward(features, u, adj, y_cf, p):
    with jax.default_matmul_precision("highest"):
        B, N, F = features.shape
        eye = jnp.eye(N, dtype=features.dtype)
        adj2 = jnp.where(eye[None] > 0, 1.0, adj)
        deg = jnp.maximum(adj2.sum(-1), 1.0)
        dis = deg ** -0.5
        adj_n = dis[:, :, None] * adj2 * dis[:, None, :]
        xw = jnp.einsum('bnf,fh->bnh', features, p['gcn_w'])
        hrep = jnp.einsum('bnm,bmh->bnh', adj_n, xw) + p['gcn_b']
        rep = hrep.sum(axis=1)                              # 'mean' pooling == sum

        z_u_mu = u @ p['wpm'] + p['bpm']
        z_u_logvar = jax.nn.sigmoid(u @ p['wpv'] + p['bpv'])

        enc_in = jnp.concatenate([rep, u, y_cf], axis=1)
        z_mu = jnp.maximum((enc_in @ p['w_em'] + p['b_em']) * p['em_s'] + p['em_t'], 0.0)
        z_logvar = jax.nn.sigmoid(
            jnp.maximum((enc_in @ p['w_ev'] + p['b_ev']) * p['ev_s'] + p['ev_t'], 0.0))

        dec_in = jnp.concatenate([z_mu, y_cf], axis=1)      # z_sample == z_mu (eval)
        hx = jnp.maximum((dec_in @ p['w_x1'] + p['b_x1']) * p['x1_s'] + p['x1_t'], 0.0)
        hx = jnp.maximum((hx @ p['w_x2'] + p['b_x2']) * p['x2_s'] + p['x2_t'], 0.0)
        feat_rec = (hx @ p['w_x3'] + p['b_x3']).reshape(B, N, F)

        ha = jnp.maximum((dec_in @ p['w_a1'] + p['b_a1']) * p['a1_s'] + p['a1_t'], 0.0)
        ha = jnp.maximum((ha @ p['w_a2'] + p['b_a2']) * p['a2_s'] + p['a2_t'], 0.0)
        adj_rec = jax.nn.sigmoid(ha @ p['w_a3'] + p['b_a3']).reshape(B, N, N)

    return {'z_mu': z_mu, 'z_logvar': z_logvar, 'z_u_mu': z_u_mu,
            'z_u_logvar': z_u_logvar, 'features_reconst': feat_rec,
            'adj_reconst': adj_rec}


if __name__ == "__main__":
    key = jax.random.PRNGKey(0)
    # batch, max_num_nodes, x_dim, dim_h, dim_z
    B, N, F, H, Z = 20, 16, 8, 32, 16
    k1, k2, k3, k4, kp = jax.random.split(key, 5)

    features = jax.random.normal(k1, (B, N, F), jnp.float32)
    adj_raw = (jax.random.uniform(k2, (B, N, N)) > 0.5).astype(jnp.float32)
    adj = jnp.maximum(adj_raw, jnp.swapaxes(adj_raw, 1, 2))   # symmetric 0/1 adjacency
    u = jax.random.normal(k3, (B, 1), jnp.float32)
    y_cf = (jax.random.uniform(k4, (B, 1)) > 0.5).astype(jnp.float32)

    params = init_params(kp, F, H, Z, N)
    slabs = pack_params(params)   # f32 slabs; dtype=jnp.bfloat16 for the HBM-bound regime

    # tb=8 -> batch padded 20 -> 24, 3-step "parallel" batch grid (exercises padding,
    # pipelining and weight-slab residency). Production: leave tb at its larger default.
    out = graph_cfe_forward(features, u, adj, y_cf, slabs, tb=8)
    out = jax.block_until_ready(out)

    ref = reference_forward(features, u, adj, y_cf, params)
    for name in ('z_mu', 'z_logvar', 'z_u_mu', 'z_u_logvar',
                 'features_reconst', 'adj_reconst'):
        np.testing.assert_allclose(np.asarray(out[name]), np.asarray(ref[name]),
                                   rtol=5e-3, atol=5e-3)

    print("KERNEL_OK")
</pallas_src>

<mosaic_0001>
module attributes {stable_mosaic.version = 11 : i64} {
  func.func @graph_cfe_kernel(%arg0: i32, %arg1: memref<8x16x8xf32, #tpu.memory_space<vmem>>, %arg2: memref<8x16x16xf32, #tpu.memory_space<vmem>>, %arg3: memref<8x1xf32, #tpu.memory_space<vmem>>, %arg4: memref<8x1xf32, #tpu.memory_space<vmem>>, %arg5: memref<9x32xf32, #tpu.memory_space<vmem>>, %arg6: memref<2x32xf32, #tpu.memory_space<vmem>>, %arg7: memref<35x32xf32, #tpu.memory_space<vmem>>, %arg8: memref<18x64xf32, #tpu.memory_space<vmem>>, %arg9: memref<33x32xf32, #tpu.memory_space<vmem>>, %arg10: memref<33x32xf32, #tpu.memory_space<vmem>>, %arg11: memref<33x128xf32, #tpu.memory_space<vmem>>, %arg12: memref<33x256xf32, #tpu.memory_space<vmem>>, %arg13: memref<8x64xf32, #tpu.memory_space<vmem>>, %arg14: memref<8x128xf32, #tpu.memory_space<vmem>>, %arg15: memref<8x256xf32, #tpu.memory_space<vmem>>) attributes {dimension_semantics = [#tpu.dimension_semantics<parallel>], iteration_bounds = array<i64: 3>, scalar_prefetch = 0 : i64, scratch_operands = 0 : i64, tpu.core_type = #tpu.core_type<tc>, window_params = [{transform_indices = @transform_0, window_bounds = array<i64: 8, 16, 8>}, {transform_indices = @transform_1, window_bounds = array<i64: 8, 16, 16>}, {transform_indices = @transform_2, window_bounds = array<i64: 8, 1>}, {transform_indices = @transform_3, window_bounds = array<i64: 8, 1>}, {pipeline_mode = #tpu.pipeline_mode<synchronous>, transform_indices = @transform_4, window_bounds = array<i64: 9, 32>}, {pipeline_mode = #tpu.pipeline_mode<synchronous>, transform_indices = @transform_5, window_bounds = array<i64: 2, 32>}, {pipeline_mode = #tpu.pipeline_mode<synchronous>, transform_indices = @transform_6, window_bounds = array<i64: 35, 32>}, {pipeline_mode = #tpu.pipeline_mode<synchronous>, transform_indices = @transform_7, window_bounds = array<i64: 18, 64>}, {pipeline_mode = #tpu.pipeline_mode<synchronous>, transform_indices = @transform_8, window_bounds = array<i64: 33, 32>}, {pipeline_mode = #tpu.pipeline_mode<synchronous>, transform_indices = @transform_9, window_bounds = array<i64: 33, 32>}, {pipeline_mode = #tpu.pipeline_mode<synchronous>, transform_indices = @transform_10, window_bounds = array<i64: 33, 128>}, {pipeline_mode = #tpu.pipeline_mode<synchronous>, transform_indices = @transform_11, window_bounds = array<i64: 33, 256>}, {transform_indices = @transform_12, window_bounds = array<i64: 8, 64>}, {transform_indices = @transform_13, window_bounds = array<i64: 8, 128>}, {transform_indices = @transform_14, window_bounds = array<i64: 8, 256>}]} {
    %c0 = arith.constant 0 : index
    %c0_0 = arith.constant 0 : index
    %c0_1 = arith.constant 0 : index
    %0 = vector.load %arg1[%c0, %c0_0, %c0_1] : memref<8x16x8xf32, #tpu.memory_space<vmem>>, vector<8x16x8xf32>
    %c0_2 = arith.constant 0 : index
    %c0_3 = arith.constant 0 : index
    %c0_4 = arith.constant 0 : index
    %1 = vector.load %arg2[%c0_2, %c0_3, %c0_4] : memref<8x16x16xf32, #tpu.memory_space<vmem>>, vector<8x16x16xf32>
    %2 = tpu.iota {dimensions = array<i32: 0>} : vector<16x16xi32>
    %3 = tpu.iota {dimensions = array<i32: 1>} : vector<16x16xi32>
    %4 = arith.cmpi eq, %2, %3 : vector<16x16xi32>
    %5 = vector.shape_cast %4 : vector<16x16xi1> to vector<1x16x16xi1>
    %cst = arith.constant 1.000000e+00 : f32
    %6 = vector.shape_cast %5 : vector<1x16x16xi1> to vector<1x16x16xi1>
    %7 = vector.broadcast %6 : vector<1x16x16xi1> to vector<8x16x16xi1>
    %8 = vector.broadcast %cst : f32 to vector<8x16x16xf32>
    %9 = arith.select %7, %8, %1 : vector<8x16x16xi1>, vector<8x16x16xf32>
    %cst_5 = arith.constant dense<0.000000e+00> : vector<8x16xf32>
    %10 = vector.multi_reduction <add>, %9, %cst_5 [2] : vector<8x16x16xf32> to vector<8x16xf32>
    %cst_6 = arith.constant 1.000000e+00 : f32
    %11 = vector.broadcast %cst_6 : f32 to vector<8x16xf32>
    %12 = arith.maximumf %10, %11 : vector<8x16xf32>
    %13 = math.sqrt %12 : vector<8x16xf32>
    %cst_7 = arith.constant 1.000000e+00 : f32
    %14 = vector.broadcast %cst_7 : f32 to vector<8x16xf32>
    %15 = arith.divf %14, %13 : vector<8x16xf32>
    %16 = vector.shape_cast %15 : vector<8x16xf32> to vector<8x16x1xf32>
    %17 = vector.broadcast %16 : vector<8x16x1xf32> to vector<8x16x16xf32>
    %18 = arith.mulf %17, %9 : vector<8x16x16xf32>
    %cst_8 = arith.constant dense<0.000000e+00> : vector<8x16xf32>
    %19 = vector.multi_reduction <add>, %18, %cst_8 [1] : vector<8x16x16xf32> to vector<8x16xf32>
    %20 = arith.mulf %15, %19 : vector<8x16xf32>
    %21 = vector.shape_cast %20 : vector<8x16xf32> to vector<8x16x1xf32>
    %22 = vector.broadcast %21 : vector<8x16x1xf32> to vector<8x16x8xf32>
    %23 = arith.mulf %22, %0 : vector<8x16x8xf32>
    %cst_9 = arith.constant dense<0.000000e+00> : vector<8x8xf32>
    %24 = vector.multi_reduction <add>, %23, %cst_9 [1] : vector<8x16x8xf32> to vector<8x8xf32>
    %c0_10 = arith.constant 0 : index
    %c0_11 = arith.constant 0 : index
    %25 = vector.load %arg5[%c0_10, %c0_11] : memref<9x32xf32, #tpu.memory_space<vmem>>, vector<8x32xf32>
    %cst_12 = arith.constant dense<0.000000e+00> : vector<8x32xf32>
    %26 = tpu.matmul %24, %25, %cst_12 {dimension_numbers = #tpu.dot_dimension_numbers<[1], [0], [0], [1], [0, 0, 1, 1], [], []>} : vector<8x8xf32>, vector<8x32xf32>, vector<8x32xf32> -> vector<8x32xf32>
    %c8 = arith.constant 8 : index
    %c0_13 = arith.constant 0 : index
    %27 = vector.load %arg5[%c8, %c0_13] : memref<9x32xf32, #tpu.memory_space<vmem>>, vector<1x32xf32>
    %cst_14 = arith.constant 1.600000e+01 : f32
    %28 = vector.broadcast %cst_14 : f32 to vector<1x32xf32>
    %29 = arith.mulf %28, %27 : vector<1x32xf32>
    %30 = vector.broadcast %29 : vector<1x32xf32> to vector<8x32xf32>
    %31 = arith.addf %26, %30 : vector<8x32xf32>
    %c0_15 = arith.constant 0 : index
    %c0_16 = arith.constant 0 : index
    %32 = vector.load %arg3[%c0_15, %c0_16] : memref<8x1xf32, #tpu.memory_space<vmem>>, vector<8x1xf32>
    %c0_17 = arith.constant 0 : index
    %c0_18 = arith.constant 0 : index
    %33 = vector.load %arg4[%c0_17, %c0_18] : memref<8x1xf32, #tpu.memory_space<vmem>>, vector<8x1xf32>
    %c0_19 = arith.constant 0 : index
    %c0_20 = arith.constant 0 : index
    %34 = vector.load %arg6[%c0_19, %c0_20] : memref<2x32xf32, #tpu.memory_space<vmem>>, vector<1x32xf32>
    %35 = vector.broadcast %32 : vector<8x1xf32> to vector<8x32xf32>
    %36 = vector.broadcast %34 : vector<1x32xf32> to vector<8x32xf32>
    %37 = arith.mulf %35, %36 : vector<8x32xf32>
    %c1 = arith.constant 1 : index
    %c0_21 = arith.constant 0 : index
    %38 = vector.load %arg6[%c1, %c0_21] : memref<2x32xf32, #tpu.memory_space<vmem>>, vector<1x32xf32>
    %39 = vector.broadcast %38 : vector<1x32xf32> to vector<8x32xf32>
    %40 = arith.addf %37, %39 : vector<8x32xf32>
    %c0_22 = arith.constant 0 : index
    %c0_23 = arith.constant 0 : index
    %41 = vector.load %arg7[%c0_22, %c0_23] : memref<35x32xf32, #tpu.memory_space<vmem>>, vector<32x32xf32>
    %cst_24 = arith.constant dense<0.000000e+00> : vector<8x32xf32>
    %42 = tpu.matmul %31, %41, %cst_24 {dimension_numbers = #tpu.dot_dimension_numbers<[1], [0], [0], [1], [0, 0, 1, 1], [], []>} : vector<8x32xf32>, vector<32x32xf32>, vector<8x32xf32> -> vector<8x32xf32>
    %c32 = arith.constant 32 : index
    %c0_25 = arith.constant 0 : index
    %43 = vector.load %arg7[%c32, %c0_25] : memref<35x32xf32, #tpu.memory_space<vmem>>, vector<1x32xf32>
    %44 = vector.broadcast %32 : vector<8x1xf32> to vector<8x32xf32>
    %45 = vector.broadcast %43 : vector<1x32xf32> to vector<8x32xf32>
    %46 = arith.mulf %44, %45 : vector<8x32xf32>
    %47 = arith.addf %42, %46 : vector<8x32xf32>
    %c33 = arith.constant 33 : index
    %c0_26 = arith.constant 0 : index
    %48 = vector.load %arg7[%c33, %c0_26] : memref<35x32xf32, #tpu.memory_space<vmem>>, vector<1x32xf32>
    %49 = vector.broadcast %33 : vector<8x1xf32> to vector<8x32xf32>
    %50 = vector.broadcast %48 : vector<1x32xf32> to vector<8x32xf32>
    %51 = arith.mulf %49, %50 : vector<8x32xf32>
    %52 = arith.addf %47, %51 : vector<8x32xf32>
    %c34 = arith.constant 34 : index
    %c0_27 = arith.constant 0 : index
    %53 = vector.load %arg7[%c34, %c0_27] : memref<35x32xf32, #tpu.memory_space<vmem>>, vector<1x32xf32>
    %54 = vector.broadcast %53 : vector<1x32xf32> to vector<8x32xf32>
    %55 = arith.addf %52, %54 : vector<8x32xf32>
    %cst_28 = arith.constant 0.000000e+00 : f32
    %56 = vector.broadcast %cst_28 : f32 to vector<8x32xf32>
    %57 = arith.maximumf %55, %56 : vector<8x32xf32>
    %58 = vector.extract_strided_slice %57 {offsets = [0, 0], sizes = [8, 16], strides = [1, 1]} : vector<8x32xf32> to vector<8x16xf32>
    %c0_29 = arith.constant 0 : index
    %c0_30 = arith.constant 0 : index
    %59 = vector.load %arg13[%c0_29, %c0_30] : memref<8x64xf32, #tpu.memory_space<vmem>>, vector<8x16xf32>
    tpu.vector_store %arg13[%c0_29, %c0_30], %58 {strides = array<i32>} : memref<8x64xf32, #tpu.memory_space<vmem>>, vector<8x16xf32>,
    %60 = vector.extract_strided_slice %57 {offsets = [0, 16], sizes = [8, 16], strides = [1, 1]} : vector<8x32xf32> to vector<8x16xf32>
    %61 = arith.negf %60 : vector<8x16xf32>
    %62 = math.exp %61 : vector<8x16xf32>
    %cst_31 = arith.constant 1.000000e+00 : f32
    %63 = vector.broadcast %cst_31 : f32 to vector<8x16xf32>
    %64 = arith.addf %63, %62 : vector<8x16xf32>
    %65 = arith.divf %63, %64 : vector<8x16xf32>
    %c0_32 = arith.constant 0 : index
    %c16 = arith.constant 16 : index
    %66 = vector.load %arg13[%c0_32, %c16] : memref<8x64xf32, #tpu.memory_space<vmem>>, vector<8x16xf32>
    tpu.vector_store %arg13[%c0_32, %c16], %65 {strides = array<i32>} : memref<8x64xf32, #tpu.memory_space<vmem>>, vector<8x16xf32>,
    %67 = vector.extract_strided_slice %40 {offsets = [0, 0], sizes = [8, 16], strides = [1, 1]} : vector<8x32xf32> to vector<8x16xf32>
    %c0_33 = arith.constant 0 : index
    %c32_34 = arith.constant 32 : index
    %68 = vector.load %arg13[%c0_33, %c32_34] : memref<8x64xf32, #tpu.memory_space<vmem>>, vector<8x16xf32>
    tpu.vector_store %arg13[%c0_33, %c32_34], %67 {strides = array<i32>} : memref<8x64xf32, #tpu.memory_space<vmem>>, vector<8x16xf32>,
    %69 = vector.extract_strided_slice %40 {offsets = [0, 16], sizes = [8, 16], strides = [1, 1]} : vector<8x32xf32> to vector<8x16xf32>
    %70 = arith.negf %69 : vector<8x16xf32>
    %71 = math.exp %70 : vector<8x16xf32>
    %cst_35 = arith.constant 1.000000e+00 : f32
    %72 = vector.broadcast %cst_35 : f32 to vector<8x16xf32>
    %73 = arith.addf %72, %71 : vector<8x16xf32>
    %74 = arith.divf %72, %73 : vector<8x16xf32>
    %c0_36 = arith.constant 0 : index
    %c48 = arith.constant 48 : index
    %75 = vector.load %arg13[%c0_36, %c48] : memref<8x64xf32, #tpu.memory_space<vmem>>, vector<8x16xf32>
    tpu.vector_store %arg13[%c0_36, %c48], %74 {strides = array<i32>} : memref<8x64xf32, #tpu.memory_space<vmem>>, vector<8x16xf32>,
    %c0_37 = arith.constant 0 : index
    %c0_38 = arith.constant 0 : index
    %76 = vector.load %arg8[%c0_37, %c0_38] : memref<18x64xf32, #tpu.memory_space<vmem>>, vector<16x64xf32>
    %cst_39 = arith.constant dense<0.000000e+00> : vector<8x64xf32>
    %77 = tpu.matmul %58, %76, %cst_39 {dimension_numbers = #tpu.dot_dimension_numbers<[1], [0], [0], [1], [0, 0, 1, 1], [], []>} : vector<8x16xf32>, vector<16x64xf32>, vector<8x64xf32> -> vector<8x64xf32>
    %c16_40 = arith.constant 16 : index
    %c0_41 = arith.constant 0 : index
    %78 = vector.load %arg8[%c16_40, %c0_41] : memref<18x64xf32, #tpu.memory_space<vmem>>, vector<1x64xf32>
    %79 = vector.broadcast %33 : vector<8x1xf32> to vector<8x64xf32>
    %80 = vector.broadcast %78 : vector<1x64xf32> to vector<8x64xf32>
    %81 = arith.mulf %79, %80 : vector<8x64xf32>
    %82 = arith.addf %77, %81 : vector<8x64xf32>
    %c17 = arith.constant 17 : index
    %c0_42 = arith.constant 0 : index
    %83 = vector.load %arg8[%c17, %c0_42] : memref<18x64xf32, #tpu.memory_space<vmem>>, vector<1x64xf32>
    %84 = vector.broadcast %83 : vector<1x64xf32> to vector<8x64xf32>
    %85 = arith.addf %82, %84 : vector<8x64xf32>
    %cst_43 = arith.constant 0.000000e+00 : f32
    %86 = vector.broadcast %cst_43 : f32 to vector<8x64xf32>
    %87 = arith.maximumf %85, %86 : vector<8x64xf32>
    %88 = vector.extract_strided_slice %87 {offsets = [0, 0], sizes = [8, 32], strides = [1, 1]} : vector<8x64xf32> to vector<8x32xf32>
    %c0_44 = arith.constant 0 : index
    %c0_45 = arith.constant 0 : index
    %89 = vector.load %arg9[%c0_44, %c0_45] : memref<33x32xf32, #tpu.memory_space<vmem>>, vector<32x32xf32>
    %cst_46 = arith.constant dense<0.000000e+00> : vector<8x32xf32>
    %90 = tpu.matmul %88, %89, %cst_46 {dimension_numbers = #tpu.dot_dimension_numbers<[1], [0], [0], [1], [0, 0, 1, 1], [], []>} : vector<8x32xf32>, vector<32x32xf32>, vector<8x32xf32> -> vector<8x32xf32>
    %c32_47 = arith.constant 32 : index
    %c0_48 = arith.constant 0 : index
    %91 = vector.load %arg9[%c32_47, %c0_48] : memref<33x32xf32, #tpu.memory_space<vmem>>, vector<1x32xf32>
    %92 = vector.broadcast %91 : vector<1x32xf32> to vector<8x32xf32>
    %93 = arith.addf %90, %92 : vector<8x32xf32>
    %cst_49 = arith.constant 0.000000e+00 : f32
    %94 = vector.broadcast %cst_49 : f32 to vector<8x32xf32>
    %95 = arith.maximumf %93, %94 : vector<8x32xf32>
    %96 = vector.extract_strided_slice %87 {offsets = [0, 32], sizes = [8, 32], strides = [1, 1]} : vector<8x64xf32> to vector<8x32xf32>
    %c0_50 = arith.constant 0 : index
    %c0_51 = arith.constant 0 : index
    %97 = vector.load %arg10[%c0_50, %c0_51] : memref<33x32xf32, #tpu.memory_space<vmem>>, vector<32x32xf32>
    %cst_52 = arith.constant dense<0.000000e+00> : vector<8x32xf32>
    %98 = tpu.matmul %96, %97, %cst_52 {dimension_numbers = #tpu.dot_dimension_numbers<[1], [0], [0], [1], [0, 0, 1, 1], [], []>} : vector<8x32xf32>, vector<32x32xf32>, vector<8x32xf32> -> vector<8x32xf32>
    %c32_53 = arith.constant 32 : index
    %c0_54 = arith.constant 0 : index
    %99 = vector.load %arg10[%c32_53, %c0_54] : memref<33x32xf32, #tpu.memory_space<vmem>>, vector<1x32xf32>
    %100 = vector.broadcast %99 : vector<1x32xf32> to vector<8x32xf32>
    %101 = arith.addf %98, %100 : vector<8x32xf32>
    %cst_55 = arith.constant 0.000000e+00 : f32
    %102 = vector.broadcast %cst_55 : f32 to vector<8x32xf32>
    %103 = arith.maximumf %101, %102 : vector<8x32xf32>
    %c0_56 = arith.constant 0 : index
    %c0_57 = arith.constant 0 : index
    %104 = vector.load %arg11[%c0_56, %c0_57] : memref<33x128xf32, #tpu.memory_space<vmem>>, vector<32x128xf32>
    %cst_58 = arith.constant dense<0.000000e+00> : vector<8x128xf32>
    %105 = tpu.matmul %95, %104, %cst_58 {dimension_numbers = #tpu.dot_dimension_numbers<[1], [0], [0], [1], [0, 0, 1, 1], [], []>} : vector<8x32xf32>, vector<32x128xf32>, vector<8x128xf32> -> vector<8x128xf32>
    %c32_59 = arith.constant 32 : index
    %c0_60 = arith.constant 0 : index
    %106 = vector.load %arg11[%c32_59, %c0_60] : memref<33x128xf32, #tpu.memory_space<vmem>>, vector<1x128xf32>
    %107 = vector.broadcast %106 : vector<1x128xf32> to vector<8x128xf32>
    %108 = arith.addf %105, %107 : vector<8x128xf32>
    %c0_61 = arith.constant 0 : index
    %c0_62 = arith.constant 0 : index
    %109 = vector.load %arg14[%c0_61, %c0_62] : memref<8x128xf32, #tpu.memory_space<vmem>>, vector<8x128xf32>
    tpu.vector_store %arg14[%c0_61, %c0_62], %108 {strides = array<i32>} : memref<8x128xf32, #tpu.memory_space<vmem>>, vector<8x128xf32>,
    %c0_63 = arith.constant 0 : index
    %c0_64 = arith.constant 0 : index
    %110 = vector.load %arg12[%c0_63, %c0_64] : memref<33x256xf32, #tpu.memory_space<vmem>>, vector<32x256xf32>
    %cst_65 = arith.constant dense<0.000000e+00> : vector<8x256xf32>
    %111 = tpu.matmul %103, %110, %cst_65 {dimension_numbers = #tpu.dot_dimension_numbers<[1], [0], [0], [1], [0, 0, 1, 1], [], []>} : vector<8x32xf32>, vector<32x256xf32>, vector<8x256xf32> -> vector<8x256xf32>
    %c32_66 = arith.constant 32 : index
    %c0_67 = arith.constant 0 : index
    %112 = vector.load %arg12[%c32_66, %c0_67] : memref<33x256xf32, #tpu.memory_space<vmem>>, vector<1x256xf32>
    %113 = vector.broadcast %112 : vector<1x256xf32> to vector<8x256xf32>
    %114 = arith.addf %111, %113 : vector<8x256xf32>
    %115 = arith.negf %114 : vector<8x256xf32>
    %116 = math.exp %115 : vector<8x256xf32>
    %cst_68 = arith.constant 1.000000e+00 : f32
    %117 = vector.broadcast %cst_68 : f32 to vector<8x256xf32>
    %118 = arith.addf %117, %116 : vector<8x256xf32>
    %119 = arith.divf %117, %118 : vector<8x256xf32>
    %c0_69 = arith.constant 0 : index
    %c0_70 = arith.constant 0 : index
    %120 = vector.load %arg15[%c0_69, %c0_70] : memref<8x256xf32, #tpu.memory_space<vmem>>, vector<8x256xf32>
    tpu.vector_store %arg15[%c0_69, %c0_70], %119 {strides = array<i32>} : memref<8x256xf32, #tpu.memory_space<vmem>>, vector<8x256xf32>,
    return
  }
  func.func @transform_0(%arg0: i32) -> (i32, i32, i32) {
    %c0_i32 = arith.constant 0 : i32
    %c0_i32_0 = arith.constant 0 : i32
    %c0_i32_1 = arith.constant 0 : i32
    return %arg0, %c0_i32, %c0_i32_0 : i32, i32, i32
  }
  func.func @transform_1(%arg0: i32) -> (i32, i32, i32) {
    %c0_i32 = arith.constant 0 : i32
    %c0_i32_0 = arith.constant 0 : i32
    %c0_i32_1 = arith.constant 0 : i32
    return %arg0, %c0_i32, %c0_i32_0 : i32, i32, i32
  }
  func.func @transform_2(%arg0: i32) -> (i32, i32) {
    %c0_i32 = arith.constant 0 : i32
    %c0_i32_0 = arith.constant 0 : i32
    return %arg0, %c0_i32 : i32, i32
  }
  func.func @transform_3(%arg0: i32) -> (i32, i32) {
    %c0_i32 = arith.constant 0 : i32
    %c0_i32_0 = arith.constant 0 : i32
    return %arg0, %c0_i32 : i32, i32
  }
  func.func @transform_4(%arg0: i32) -> (i32, i32) {
    %c0_i32 = arith.constant 0 : i32
    %c0_i32_0 = arith.constant 0 : i32
    %c0_i32_1 = arith.constant 0 : i32
    return %c0_i32, %c0_i32_0 : i32, i32
  }
  func.func @transform_5(%arg0: i32) -> (i32, i32) {
    %c0_i32 = arith.constant 0 : i32
    %c0_i32_0 = arith.constant 0 : i32
    %c0_i32_1 = arith.constant 0 : i32
    return %c0_i32, %c0_i32_0 : i32, i32
  }
  func.func @transform_6(%arg0: i32) -> (i32, i32) {
    %c0_i32 = arith.constant 0 : i32
    %c0_i32_0 = arith.constant 0 : i32
    %c0_i32_1 = arith.constant 0 : i32
    return %c0_i32, %c0_i32_0 : i32, i32
  }
  func.func @transform_7(%arg0: i32) -> (i32, i32) {
    %c0_i32 = arith.constant 0 : i32
    %c0_i32_0 = arith.constant 0 : i32
    %c0_i32_1 = arith.constant 0 : i32
    return %c0_i32, %c0_i32_0 : i32, i32
  }
  func.func @transform_8(%arg0: i32) -> (i32, i32) {
    %c0_i32 = arith.constant 0 : i32
    %c0_i32_0 = arith.constant 0 : i32
    %c0_i32_1 = arith.constant 0 : i32
    return %c0_i32, %c0_i32_0 : i32, i32
  }
  func.func @transform_9(%arg0: i32) -> (i32, i32) {
    %c0_i32 = arith.constant 0 : i32
    %c0_i32_0 = arith.constant 0 : i32
    %c0_i32_1 = arith.constant 0 : i32
    return %c0_i32, %c0_i32_0 : i32, i32
  }
  func.func @transform_10(%arg0: i32) -> (i32, i32) {
    %c0_i32 = arith.constant 0 : i32
    %c0_i32_0 = arith.constant 0 : i32
    %c0_i32_1 = arith.constant 0 : i32
    return %c0_i32, %c0_i32_0 : i32, i32
  }
  func.func @transform_11(%arg0: i32) -> (i32, i32) {
    %c0_i32 = arith.constant 0 : i32
    %c0_i32_0 = arith.constant 0 : i32
    %c0_i32_1 = arith.constant 0 : i32
    return %c0_i32, %c0_i32_0 : i32, i32
  }
  func.func @transform_12(%arg0: i32) -> (i32, i32) {
    %c0_i32 = arith.constant 0 : i32
    %c0_i32_0 = arith.constant 0 : i32
    return %arg0, %c0_i32 : i32, i32
  }
  func.func @transform_13(%arg0: i32) -> (i32, i32) {
    %c0_i32 = arith.constant 0 : i32
    %c0_i32_0 = arith.constant 0 : i32
    return %arg0, %c0_i32 : i32, i32
  }
  func.func @transform_14(%arg0: i32) -> (i32, i32) {
    %c0_i32 = arith.constant 0 : i32
    %c0_i32_0 = arith.constant 0 : i32
    return %arg0, %c0_i32 : i32, i32
  }
}

</mosaic_0001>

<bundles_post_ra>
// kernel: graph_cfe_forward.1
= control target key start
LH: loop header
LB: loop body
LE: loop exit
PB: predicated region body
PF: predicated region fallthrough
CT: control target
= control target key end

     0   :  { %s2332_s29 = smov 0   ;;  %s2979_s0 = inlined_call_operand.vmem [shape: f32[24,16,8], index: 0, kind: input, shape index: {}]   ;;  %s2980_s1 = inlined_call_operand.vmem [shape: f32[24,16,16], index: 1, kind: input, shape index: {}]   ;;  %s2981_s2 = inlined_call_operand.vmem [shape: f32[24,1], index: 2, kind: input, shape index: {}]   ;;  %s2982_s3 = inlined_call_operand.vmem [shape: f32[24,1], index: 3, kind: input, shape index: {}]   ;;  %s2983_s4 = inlined_call_operand.vmem [shape: f32[9,32], index: 4, kind: input, shape index: {}]   ;;  %s2984_s5 = inlined_call_operand.vmem [shape: f32[2,32], index: 5, kind: input, shape index: {}]   ;;  %s2985_s6 = inlined_call_operand.vmem [shape: f32[35,32], index: 6, kind: input, shape index: {}]   ;;  %s2986_s7 = inlined_call_operand.vmem [shape: f32[18,64], index: 7, kind: input, shape index: {}]   ;;  %s2987_s8 = inlined_call_operand.vmem [shape: f32[33,32], index: 8, kind: input, shape index: {}]   ;;  %s2988_s9 = inlined_call_operand.vmem [shape: f32[33,32], index: 9, kind: input, shape index: {}]   ;;  %s2989_s10 = inlined_call_operand.vmem [shape: f32[33,128], index: 10, kind: input, shape index: {}]   ;;  %s2990_s11 = inlined_call_operand.vmem [shape: f32[33,256], index: 11, kind: input, shape index: {}]   ;;  %s2991_s12 = inlined_call_operand.vmem [shape: f32[24,64], index: 12, kind: output, shape index: {0}]   ;;  %s2992_s13 = inlined_call_operand.vmem [shape: f32[24,128], index: 13, kind: output, shape index: {1}]   ;;  %s2993_s14 = inlined_call_operand.vmem [shape: f32[24,256], index: 14, kind: output, shape index: {2}]  }
   0x1 LB: > { %s2338_s30 = sadd.s32 4294967295, %s2250_s29   ;;  %p2028_p0 = scmp.ge.s32.totalorder %s2250_s29, 1  ;;  %s2250_s29 = sphi %s2332_s29, %s25_s29  }
   0x2   : > { %p449_p1 = scmp.lt.s32.totalorder %s2250_s29, 4 }
   0x4   : > { %p450_p2 = pnand %p2028_p0, %p449_p1 }
   0x5   : > { %s2029_s15 = sshll.u32 (!%p450_p2), %s2338_s30, 3  ;;  %p532_p4 = scmp.lt.s32.totalorder (!%p450_p2), %s2338_s30, 2 }
   0x6   : > { %453 = sbr.rel (%p450_p2) target bundleno = 1640 (0x668), region = 68  ;;  %p519_p3 = scmp.lt.s32.totalorder (!%p450_p2), %s2029_s15, 23 }
   0x7   : > { %s2255_s27 = smov (!%p450_p2), 32   ;;  %s2256_s22 = smov (!%p450_p2), 96  }
   0xb   : > { %v585_v0 = vlaneseq  ;;  %s2999_s15 = smov (!%p519_p3, %s2029_s15), 23  ;;  %vm612_vm1 = vcmask 130048   ;;  %s3001_s30 = smov (!%p532_p4, %s2338_s30), 2 }
   0xc   : > { %s2065_s16 = sshll.u32 %s2999_s15, 4  ;;  %s2734_s20 = sshll.u32 %s3001_s30, 3 }
   0xd   : > { %v2343_v1 = vshrl.u32 %v585_v0, 7  ;;  %v589_v2 = vand.u32 127, %v585_v0  ;;  %s2359_s19 = scalar_lea.vmem %s2980_s1, %s2065_s16  ;;  %s535_s23 = scalar_lea.vmem %s2981_s2, %s2734_s20 }
   0xe   : > { %v571_v6 = vld [vmem:[%s2359_s19 + $0x10] sm:$0xff]  ;;  %v569_v7 = vld [vmem:[%s2359_s19] sm:$0xff]  ;;  %v572_v8 = vld [vmem:[%s2359_s19 + $0x18] sm:$0xff]  ;;  %s539_s26 = scalar_lea.vmem %s2982_s3, %s2734_s20  ;;  %s2858_s21 = scalar_lea.vmem %s2991_s12, %s2734_s20 }
   0xf   : > { %v587_v3 = vadd.s32 8, %v2343_v1  ;;  %vm2350_vm0 = vcmp.eq.s32.totalorder %v2343_v1, %v589_v2  ;;  %v570_v12 = vld [vmem:[%s2359_s19 + $0x8] sm:$0xff]  ;;  %v573_v17 = vld [vmem:[%s2359_s19 + $0x20] sm:$0xff]  ;;  %v576_v22 = vld [vmem:[%s2359_s19 + $0x38] sm:$0xff]  ;;  %s547_s17 = scalar_lea.vmem %s2992_s13, %s2734_s20  ;;  %s2067_s20 = sshll.u32 %s3001_s30, 4 }
  0x10   : > { %v2370_v9 = vsel %vm2350_vm0, 1.0, %v571_v6  ;;  %v2374_v10 = vsel %vm2350_vm0, 1.0, %v569_v7  ;;  %v574_v16 = vld [vmem:[%s2359_s19 + $0x28] sm:$0xff]  ;;  %v2401_v21 = vsel %vm2350_vm0, 1.0, %v573_v17  ;;  %v575_v23 = vld [vmem:[%s2359_s19 + $0x30] sm:$0xff]  ;;  %v577_v29 = vld [vmem:[%s2359_s19 + $0x40] sm:$0xff]  ;;  %s552_s15 = scalar_lea.vmem %s2993_s14, %s2067_s20 }
  0x11   : > { %vm2361_vm2 = vcmp.eq.s32.totalorder %v587_v3, %v589_v2  ;;  %v619_v13 = vsel %vm612_vm1, %v2370_v9, 0.0  ;;  %v613_v14 = vsel %vm612_vm1, %v2374_v10, 0.0  ;;  %v625_v25 = vsel %vm612_vm1, %v2401_v21, 0.0  ;;  %v578_v28 = vld [vmem:[%s2359_s19 + $0x48] sm:$0xff]  ;;  %v580_v34 = vld [vmem:[%s2359_s19 + $0x58] sm:$0xff]  ;;  %v579_v35 = vld [vmem:[%s2359_s19 + $0x50] sm:$0xff] }
  0x12   : > { %v2378_v11 = vsel %vm2361_vm2, 1.0, %v572_v8  ;;  %v2387_v15 = vsel %vm2361_vm2, 1.0, %v570_v12  ;;  %620 = vadd.xlane.f32.xlu1 %v619_v13  ;;  %614 = vadd.xlane.f32.xlu0 %v613_v14  ;;  %v2397_v20 = vsel %vm2361_vm2, 1.0, %v574_v16  ;;  %v2411_v26 = vsel %vm2361_vm2, 1.0, %v576_v22  ;;  %v582_v40 = vld [vmem:[%s2359_s19 + $0x68] sm:$0xff]  ;;  %v581_v41 = vld [vmem:[%s2359_s19 + $0x60] sm:$0xff] }
  0x13   : > { %v622_v18 = vsel %vm612_vm1, %v2378_v11, 0.0  ;;  %v616_v19 = vsel %vm612_vm1, %v2387_v15, 0.0  ;;  %v628_v24 = vsel %vm612_vm1, %v2397_v20, 0.0  ;;  %v2415_v27 = vsel %vm2350_vm0, 1.0, %v575_v23  ;;  %v584_v46 = vld [vmem:[%s2359_s19 + $0x78] sm:$0xff]  ;;  %v583_v47 = vld [vmem:[%s2359_s19 + $0x70] sm:$0xff]  ;;  %s2761_s19 = scalar_lea.vmem %s2979_s0, %s2065_s16 }
  0x14   : > { %v634_v30 = vsel %vm612_vm1, %v2411_v26, 0.0  ;;  %v631_v31 = vsel %vm612_vm1, %v2415_v27, 0.0  ;;  %v2425_v32 = vsel %vm2361_vm2, 1.0, %v578_v28  ;;  %v2429_v33 = vsel %vm2350_vm0, 1.0, %v577_v29 }
  0x15   : > { %v640_v36 = vsel %vm612_vm1, %v2425_v32, 0.0  ;;  %v637_v37 = vsel %vm612_vm1, %v2429_v33, 0.0  ;;  %v2439_v38 = vsel %vm2361_vm2, 1.0, %v580_v34  ;;  %v2443_v39 = vsel %vm2350_vm0, 1.0, %v579_v35 }
  0x16   : > { %623 = vadd.xlane.f32.xlu1 %v622_v18  ;;  %617 = vadd.xlane.f32.xlu0 %v616_v19  ;;  %v646_v42 = vsel %vm612_vm1, %v2439_v38, 0.0  ;;  %v643_v43 = vsel %vm612_vm1, %v2443_v39, 0.0  ;;  %v2453_v44 = vsel %vm2361_vm2, 1.0, %v582_v40  ;;  %v2457_v45 = vsel %vm2350_vm0, 1.0, %v581_v41 }
  0x17   : > { %v652_v48 = vsel %vm612_vm1, %v2453_v44, 0.0  ;;  %v649_v49 = vsel %vm612_vm1, %v2457_v45, 0.0  ;;  %v2467_v50 = vsel %vm2361_vm2, 1.0, %v584_v46  ;;  %v2471_v51 = vsel %vm2350_vm0, 1.0, %v583_v47 }
  0x18   : > { %v658_v52 = vsel %vm612_vm1, %v2467_v50, 0.0  ;;  %v655_v53 = vsel %vm612_vm1, %v2471_v51, 0.0 }
  0x1a   : > { %629 = vadd.xlane.f32.xlu1 %v628_v24  ;;  %626 = vadd.xlane.f32.xlu0 %v625_v25 }
  0x1e   : > { %635 = vadd.xlane.f32.xlu1 %v634_v30  ;;  %632 = vadd.xlane.f32.xlu0 %v631_v31 }
  0x22   : > { %641 = vadd.xlane.f32.xlu1 %v640_v36  ;;  %638 = vadd.xlane.f32.xlu0 %v637_v37 }
  0x26   : > { %647 = vadd.xlane.f32.xlu1 %v646_v42  ;;  %644 = vadd.xlane.f32.xlu0 %v643_v43 }
  0x2a   : > { %653 = vadd.xlane.f32.xlu1 %v652_v48  ;;  %650 = vadd.xlane.f32.xlu0 %v649_v49 }
  0x2e   : > { %659 = vadd.xlane.f32.xlu1 %v658_v52  ;;  %656 = vadd.xlane.f32.xlu0 %v655_v53 }
  0x9b   : > { %v621_v54 = vpop.xlane.xlu1 %620  ;;  %v615_v55 = vpop.xlane.xlu0 %614 }
  0x9c   : > { %v663_v56 = vmax.f32 %v621_v54, 1.0  ;;  %v661_v57 = vmax.f32 %v615_v55, 1.0 }
  0x9e   : > { %2164 = vrsqrt.f32 %v663_v56  ;;  %vm693_vm3 = vcmp.eq.f32.partialorder %v663_v56, inf  ;;  %vm695_vm4 = vcmp.eq.f32.partialorder %v663_v56, 0.0  ;;  %v696_v8 = vand.u32 2147483648, %v663_v56 }
  0x9f   : > { %2166 = vrsqrt.f32 %v661_v57  ;;  %v624_v58 = vpop.xlane.xlu1 %623  ;;  %v618_v59 = vpop.xlane.xlu0 %617  ;;  %vm679_vm5 = vcmp.eq.f32.partialorder %v661_v57, inf  ;;  %vm681_vm6 = vcmp.eq.f32.partialorder %v661_v57, 0.0  ;;  %v682_v17 = vand.u32 2147483648, %v661_v57 }
  0xa0   : > { %v664_v60 = vmax.f32 %v624_v58, 1.0  ;;  %v2477_v61 = vmax.f32 %v618_v59, 1.0 }
  0xa2   : > { %2168 = vrsqrt.f32 %v664_v60  ;;  %vm700_vm7 = vcmp.eq.f32.partialorder %v664_v60, inf  ;;  %vm702_vm8 = vcmp.eq.f32.partialorder %v664_v60, 0.0  ;;  %v703_v23 = vand.u32 2147483648, %v664_v60 }
  0xa3   : > { %2170 = vrsqrt.f32 %v2477_v61  ;;  %v630_v62 = vpop.xlane.xlu1 %629  ;;  %v627_v63 = vpop.xlane.xlu0 %626  ;;  %vm686_vm9 = vcmp.eq.f32.partialorder %v2477_v61, inf  ;;  %vm688_vm10 = vcmp.eq.f32.partialorder %v2477_v61, 0.0  ;;  %v689_v30 = vand.u32 2147483648, %v2477_v61 }
  0xa4   : > { %v2480_v0 = vmax.f32 %v630_v62, 1.0  ;;  %v2482_v2 = vmax.f32 %v627_v63, 1.0 }
  0xa6   : > { %2172 = vrsqrt.f32 %v2480_v0  ;;  %vm714_vm11 = vcmp.eq.f32.partialorder %v2480_v0, inf  ;;  %vm716_vm12 = vcmp.eq.f32.partialorder %v2480_v0, 0.0  ;;  %v717_v41 = vand.u32 2147483648, %v2480_v0 }
  0xa7   : > { %2174 = vrsqrt.f32 %v2482_v2  ;;  %v636_v3 = vpop.xlane.xlu1 %635  ;;  %v633_v4 = vpop.xlane.xlu0 %632  ;;  %vm707_vm13 = vcmp.eq.f32.partialorder %v2482_v2, inf  ;;  %vm709_vm14 = vcmp.eq.f32.partialorder %v2482_v2, 0.0  ;;  %v710_v49 = vand.u32 2147483648, %v2482_v2 }
  0xa8   : > { %v2486_v5 = vmax.f32 %v636_v3, 1.0  ;;  %v2488_v6 = vmax.f32 %v633_v4, 1.0 }
  0xaa   : > { %2176 = vrsqrt.f32 %v2486_v5  ;;  %vm728_vm15 = vcmp.eq.f32.partialorder %v2486_v5, inf  ;;  %vm730_vm0 = vcmp.eq.f32.partialorder %v2486_v5, 0.0  ;;  %v731_v58 = vand.u32 2147483648, %v2486_v5 }
  0xab   : > { %v2165_v7 = vpop.eup %2164  ;;  %2178 = vrsqrt.f32 %v2488_v6  ;;  %v642_v12 = vpop.xlane.xlu1 %641  ;;  %vm721_vm2 = vcmp.eq.f32.partialorder %v2488_v6, inf  ;;  %v724_v3 = vand.u32 2147483648, %v2488_v6 }
  0xac   : > { %v639_v13 = vpop.xlane.xlu0 %638  ;;  %v2167_v14 = vpop.eup %2166  ;;  %v692_v16 = vmul.f32 %v2165_v7, %v663_v56  ;;  %v2492_v18 = vmax.f32 %v642_v12, 1.0 }
  0xad   : > { %v2494_v19 = vmax.f32 %v639_v13, 1.0  ;;  %v678_v22 = vmul.f32 %v2167_v14, %v661_v57 }
  0xae   : > { %v694_v24 = vsel %vm693_vm3, %v663_v56, %v692_v16  ;;  %2180 = vrsqrt.f32 %v2492_v18  ;;  %vm723_vm3 = vcmp.eq.f32.partialorder %v2488_v6, 0.0 }
  0xaf   : > { %v2169_v25 = vpop.eup %2168  ;;  %v697_v28 = vsel %vm695_vm4, %v696_v8, %v694_v24  ;;  %v680_v29 = vsel %vm679_vm5, %v661_v57, %v678_v22  ;;  %2182 = vrsqrt.f32 %v2494_v19  ;;  %v648_v31 = vpop.xlane.xlu1 %647  ;;  %vm742_vm4 = vcmp.eq.f32.partialorder %v2492_v18, inf }
  0xb0   : > { %v2171_v34 = vpop.eup %2170  ;;  %2184 = vrcp.f32 %v697_v28  ;;  %v683_v35 = vsel %vm681_vm6, %v682_v17, %v680_v29  ;;  %v699_v36 = vmul.f32 %v2169_v25, %v664_v60  ;;  %v645_v37 = vpop.xlane.xlu0 %644  ;;  %v2512_v43 = vmax.f32 %v648_v31, 1.0 }
  0xb1   : > { %2186 = vrcp.f32 %v683_v35  ;;  %v685_v40 = vmul.f32 %v2171_v34, %v2477_v61  ;;  %v2519_v52 = vmax.f32 %v645_v37, 1.0  ;;  %vm744_vm5 = vcmp.eq.f32.partialorder %v2492_v18, 0.0 }
  0xb2   : > { %v701_v42 = vsel %vm700_vm7, %v664_v60, %v699_v36  ;;  %v745_v24 = vand.u32 2147483648, %v2492_v18  ;;  %vm735_vm6 = vcmp.eq.f32.partialorder %v2494_v19, inf  ;;  %vm737_vm7 = vcmp.eq.f32.partialorder %v2494_v19, 0.0 }
  0xb3   : > { %v2173_v46 = vpop.eup %2172  ;;  %v704_v47 = vsel %vm702_vm8, %v703_v23, %v701_v42  ;;  %v687_v48 = vsel %vm686_vm9, %v2477_v61, %v685_v40  ;;  %v654_v53 = vpop.xlane.xlu1 %653  ;;  %v738_v34 = vand.u32 2147483648, %v2494_v19  ;;  %vm756_vm8 = vcmp.eq.f32.partialorder %v2512_v43, inf }
  0xb4   : > { %v2175_v54 = vpop.eup %2174  ;;  %2188 = vrcp.f32 %v704_v47  ;;  %v690_v55 = vsel %vm688_vm10, %v689_v30, %v687_v48  ;;  %v713_v56 = vmul.f32 %v2173_v46, %v2480_v0  ;;  %v651_v60 = vpop.xlane.xlu0 %650  ;;  %v2544_v13 = vmax.f32 %v654_v53, 1.0 }
  0xb5   : > { %2190 = vrcp.f32 %v690_v55  ;;  %v706_v57 = vmul.f32 %v2175_v54, %v2482_v2  ;;  %v2548_v14 = vmax.f32 %v651_v60, 1.0  ;;  %vm758_vm9 = vcmp.eq.f32.partialorder %v2512_v43, 0.0 }
  0xb6   : > { %v715_v59 = vsel %vm714_vm11, %v2480_v0, %v713_v56  ;;  %2192 = vrsqrt.f32 %v2512_v43  ;;  %v759_v40 = vand.u32 2147483648, %v2512_v43  ;;  %vm749_vm10 = vcmp.eq.f32.partialorder %v2519_v52, inf }
  0xb7   : > { %v2177_v61 = vpop.eup %2176  ;;  %v718_v62 = vsel %vm716_vm12, %v717_v41, %v715_v59  ;;  %v708_v63 = vsel %vm707_vm13, %v2482_v2, %v706_v57  ;;  %2194 = vrsqrt.f32 %v2519_v52  ;;  %v660_v4 = vpop.xlane.xlu1 %659  ;;  %vm751_vm11 = vcmp.eq.f32.partialorder %v2519_v52, 0.0 }
  0xb8   : > { %v2179_v7 = vpop.eup %2178  ;;  %2196 = vrcp.f32 %v718_v62  ;;  %v711_v8 = vsel %vm709_vm14, %v710_v49, %v708_v63  ;;  %v727_v12 = vmul.f32 %v2177_v61, %v2486_v5  ;;  %v2555_v2 = vmax.f32 %v660_v4, 1.0  ;;  %v657_v30 = vpop.xlane.xlu0 %656 }
  0xb9   : > { %2198 = vrcp.f32 %v711_v8  ;;  %v720_v0 = vmul.f32 %v2179_v7, %v2488_v6  ;;  %v2585_v41 = vmax.f32 %v657_v30, 1.0  ;;  %vm770_vm12 = vcmp.eq.f32.partialorder %v2544_v13, inf }
  0xba   : > { %v729_v16 = vsel %vm728_vm15, %v2486_v5, %v727_v12  ;;  %2200 = vrsqrt.f32 %v2544_v13  ;;  %vm772_vm13 = vcmp.eq.f32.partialorder %v2544_v13, 0.0  ;;  %v773_v53 = vand.u32 2147483648, %v2544_v13 }
  0xbb   : > { %v2181_v17 = vpop.eup %2180  ;;  %v732_v22 = vsel %vm730_vm0, %v731_v58, %v729_v16  ;;  %v722_v23 = vsel %vm721_vm2, %v2488_v6, %v720_v0  ;;  %2202 = vrsqrt.f32 %v2548_v14  ;;  %vm763_vm14 = vcmp.eq.f32.partialorder %v2548_v14, inf }
  0xbc   : > { %v2183_v25 = vpop.eup %2182  ;;  %2204 = vrcp.f32 %v732_v22  ;;  %v725_v28 = vsel %vm723_vm3, %v724_v3, %v722_v23  ;;  %v741_v29 = vmul.f32 %v2181_v17, %v2492_v18  ;;  %vm765_vm15 = vcmp.eq.f32.partialorder %v2548_v14, 0.0 }
  0xbd   : > { %v2568_v5 = vpop.eup %2184  ;;  %2206 = vrcp.f32 %v725_v28  ;;  %v734_v31 = vmul.f32 %v2183_v25, %v2494_v19  ;;  %v766_v56 = vand.u32 2147483648, %v2548_v14  ;;  %vm784_vm0 = vcmp.eq.f32.partialorder %v2555_v2, inf }
  0xbe   : > { %v2573_v35 = vpop.eup %2186  ;;  %v743_v6 = vsel %vm742_vm4, %v2492_v18, %v741_v29  ;;  %2208 = vrsqrt.f32 %v2555_v2  ;;  %v823_v46 = vmul.f32 %v2568_v5, %v2370_v9  ;;  %v752_v18 = vand.u32 2147483648, %v2519_v52 }
  0xbf   : > { %v746_v36 = vsel %vm744_vm5, %v745_v24, %v743_v6  ;;  %v736_v37 = vsel %vm735_vm6, %v2494_v19, %v734_v31  ;;  %v821_v19 = vmul.f32 %v2573_v35, %v2374_v10  ;;  %vm786_vm2 = vcmp.eq.f32.partialorder %v2555_v2, 0.0 }
  0xc0   : > { %2210 = vrcp.f32 %v746_v36  ;;  %v739_v42 = vsel %vm737_vm7, %v738_v34, %v736_v37  ;;  %v846_v57 = vsel %vm612_vm1, %v823_v46, 0.0  ;;  %v787_v3 = vand.u32 2147483648, %v2555_v2 }
  0xc1   : > { %v2590_v47 = vpop.eup %2188  ;;  %2212 = vrcp.f32 %v739_v42  ;;  %v837_v60 = vsel %vm612_vm1, %v821_v19, 0.0  ;;  %vm777_vm3 = vcmp.eq.f32.partialorder %v2585_v41, inf  ;;  %vm779_vm4 = vcmp.eq.f32.partialorder %v2585_v41, 0.0 }
  0xc2   : > { %v2596_v48 = vpop.eup %2190  ;;  %2214 = vrsqrt.f32 %v2585_v41  ;;  %v824_v9 = vmul.f32 %v2590_v47, %v2378_v11  ;;  %vm2254_vm5 = vmmov 0   ;;  %vm1101_vm6 = vcmask 64512  }
  0xc3   : > { %v2193_v49 = vpop.eup %2192  ;;  %v822_v10 = vmul.f32 %v2596_v48, %v2387_v15  ;;  %vm1189_vm7 = vcmask 1041409  }
  0xc4   : > { %v2195_v54 = vpop.eup %2194  ;;  %v755_v55 = vmul.f32 %v2193_v49, %v2512_v43  ;;  %v847_v58 = vsel %vm612_vm1, %v824_v9, 0.0 }
  0xc5   : > { %v2612_v11 = vpop.eup %2196  ;;  %v748_v59 = vmul.f32 %v2195_v54, %v2519_v52  ;;  %v838_v61 = vsel %vm612_vm1, %v822_v10, 0.0  ;;  %v848_v15 = vadd.f32 %v847_v58, %v846_v57  ;;  %v780_v58 = vand.u32 2147483648, %v2585_v41 }
  0xc6   : > { %v2618_v62 = vpop.eup %2198  ;;  %v757_v63 = vsel %vm756_vm8, %v2512_v43, %v755_v55  ;;  %v839_v4 = vadd.f32 %v838_v61, %v837_v60  ;;  %v826_v7 = vmul.f32 %v2612_v11, %v2397_v20  ;;  %vm1191_vm8 = vcmask 1042434  }
  0xc7   : > { %v2201_v8 = vpop.eup %2200  ;;  %v760_v12 = vsel %vm758_vm9, %v759_v40, %v757_v63  ;;  %v750_v0 = vsel %vm749_vm10, %v2519_v52, %v748_v59  ;;  %v849_v16 = vrot.slane %v848_v15, 4  ;;  %v825_v17 = vmul.f32 %v2618_v62, %v2401_v21 }
  0xc8   : > { %v2203_v22 = vpop.eup %2202  ;;  %2216 = vrcp.f32 %v760_v12  ;;  %v753_v23 = vsel %vm751_vm11, %v752_v18, %v750_v0  ;;  %v769_v24 = vmul.f32 %v2201_v8, %v2544_v13  ;;  %v840_v20 = vrot.slane %v839_v4, 4 }
  0xc9   : > { %v2637_v25 = vpop.eup %2204  ;;  %2218 = vrcp.f32 %v753_v23  ;;  %v762_v43 = vmul.f32 %v2203_v22, %v2548_v14  ;;  %v850_v28 = vadd.f32 %v849_v16, %v848_v15  ;;  %v855_v29 = vsel %vm612_vm1, %v825_v17, 0.0 }
  0xca   : > { %v2642_v30 = vpop.eup %2206  ;;  %v771_v21 = vsel %vm770_vm12, %v2544_v13, %v769_v24  ;;  %v841_v52 = vadd.f32 %v840_v20, %v839_v4  ;;  %v856_v31 = vsel %vm612_vm1, %v826_v7, 0.0  ;;  %v828_v34 = vmul.f32 %v2637_v25, %v2411_v26 }
  0xcb   : > { %v2209_v6 = vpop.eup %2208  ;;  %v774_v36 = vsel %vm772_vm13, %v773_v53, %v771_v21  ;;  %v764_v37 = vsel %vm763_vm14, %v2548_v14, %v762_v43  ;;  %v851_v40 = vrot.slane %v850_v28, 2  ;;  %v857_v42 = vadd.f32 %v856_v31, %v855_v29 }
  0xcc   : > { %2220 = vrcp.f32 %v774_v36  ;;  %v767_v46 = vsel %vm765_vm15, %v766_v56, %v764_v37  ;;  %v783_v18 = vmul.f32 %v2209_v6, %v2555_v2  ;;  %v842_v19 = vrot.slane %v841_v52, 2 }
  0xcd   : > { %v2659_v9 = vpop.eup %2210  ;;  %2222 = vrcp.f32 %v767_v46  ;;  %v852_v26 = vadd.f32 %v851_v40, %v850_v28  ;;  %v858_v49 = vrot.slane %v857_v42, 4  ;;  %v827_v13 = vmul.f32 %v2642_v30, %v2415_v27 }
  0xce   : > { %v2663_v53 = vpop.eup %2212  ;;  %v785_v10 = vsel %vm784_vm0, %v2555_v2, %v783_v18  ;;  %v843_v54 = vadd.f32 %v842_v19, %v841_v52  ;;  %v865_v14 = vsel %vm612_vm1, %v828_v34, 0.0  ;;  %v830_v55 = vmul.f32 %v2659_v9, %v2425_v32 }
  0xcf   : > { %v2215_v56 = vpop.eup %2214  ;;  %v788_v57 = vsel %vm786_vm2, %v787_v3, %v785_v10  ;;  %v859_v59 = vadd.f32 %v858_v49, %v857_v42  ;;  %v864_v27 = vsel %vm612_vm1, %v827_v13, 0.0  ;;  %v853_v63 = vrot.slane %v852_v26, 1 }
  0xd0   : > { %2224 = vrcp.f32 %v788_v57  ;;  %v776_v60 = vmul.f32 %v2215_v56, %v2585_v41  ;;  %v844_v61 = vrot.slane %v843_v54, 1  ;;  %v866_v15 = vadd.f32 %v865_v14, %v864_v27 }
  0xd1   : > { %v860_v4 = vrot.slane %v859_v59, 2  ;;  %v829_v7 = vmul.f32 %v2663_v53, %v2429_v33  ;;  %v874_v32 = vsel %vm612_vm1, %v830_v55, 0.0  ;;  %v2252_v17 = vmov 0  }
  0xd2   : > { %v778_v2 = vsel %vm777_vm3, %v2585_v41, %v776_v60  ;;  %v845_v3 = vadd.f32 %v844_v61, %v843_v54  ;;  %v867_v8 = vrot.slane %v866_v15, 4  ;;  %2163 = vset.pattern.permute.xlu1 %v2252_v17  ;;  %2162 = vset.pattern.permute.xlu0 %v2252_v17  ;;  %v854_v43 = vadd.f32 %v853_v63, %v852_v26 }
  0xd3   : > { %v781_v12 = vsel %vm779_vm4, %v780_v58, %v778_v2  ;;  %v861_v0 = vadd.f32 %v860_v4, %v859_v59  ;;  %v873_v16 = vsel %vm612_vm1, %v829_v7, 0.0  ;;  %vm1193_vm9 = vcmask 1043459  }
  0xd4   : > { %2226 = vrcp.f32 %v781_v12  ;;  %922 = vbcast.lane.b32.xlu1 %v845_v3, 264  ;;  %918 = vbcast.lane.b32.xlu0 %v845_v3, 256  ;;  %v868_v33 = vadd.f32 %v867_v8, %v866_v15  ;;  %v875_v22 = vadd.f32 %v874_v32, %v873_v16  ;;  %vm1195_vm10 = vcmask 1044484  }
  0xd5   : > { %v2685_v23 = vpop.eup %2216  ;;  %v862_v24 = vrot.slane %v861_v0, 1  ;;  %vm1197_vm11 = vcmask 1045509   ;;  %vm1199_vm12 = vcmask 1046534   ;;  %vm1201_vm13 = vcmask 1047559  }
  0xd6   : > { %v2687_v20 = vpop.eup %2218  ;;  %v869_v28 = vrot.slane %v868_v33, 2  ;;  %v876_v41 = vrot.slane %v875_v22, 4  ;;  %v832_v29 = vmul.f32 %v2685_v23, %v2439_v38  ;;  %vm1304_vm14 = vcmask 261120  }
  0xd7   : > { %v863_v21 = vadd.f32 %v862_v24, %v861_v0  ;;  %v831_v52 = vmul.f32 %v2687_v20, %v2443_v39  ;;  %vm1404_vm15 = vcmask 261248   ;;  %vm1410_vm0 = vcmask 392448  }
  0xd8   : > { %925 = vbcast.lane.b32.xlu1 %v854_v43, 256  ;;  %v870_v31 = vadd.f32 %v869_v28, %v868_v33  ;;  %v877_v34 = vadd.f32 %v876_v41, %v875_v22  ;;  %v883_v6 = vsel %vm612_vm1, %v832_v29, 0.0 }
  0xd9   : > { %v2694_v36 = vpop.eup %2220  ;;  %932 = vbcast.lane.b32.xlu0 %v863_v21, 256  ;;  %v882_v37 = vsel %vm612_vm1, %v831_v52, 0.0 }
  0xda   : > { %v2697_v40 = vpop.eup %2222  ;;  %v871_v42 = vrot.slane %v870_v31, 1  ;;  %v878_v46 = vrot.slane %v877_v34, 2  ;;  %v884_v18 = vadd.f32 %v883_v6, %v882_v37  ;;  %v834_v38 = vmul.f32 %v2694_v36, %v2453_v44 }
  0xdb   : > { %v833_v39 = vmul.f32 %v2697_v40, %v2457_v45 }
  0xdc   : > { %929 = vbcast.lane.b32.xlu1 %v854_v43, 264  ;;  %v872_v19 = vadd.f32 %v871_v42, %v870_v31  ;;  %v879_v26 = vadd.f32 %v878_v46, %v877_v34  ;;  %v885_v49 = vrot.slane %v884_v18, 4  ;;  %v892_v13 = vsel %vm612_vm1, %v834_v38, 0.0 }
  0xdd   : > { %v2704_v10 = vpop.eup %2224  ;;  %v891_v54 = vsel %vm612_vm1, %v833_v39, 0.0 }
  0xde   : > { %939 = vbcast.lane.b32.xlu0 %v872_v19, 256  ;;  %v880_v14 = vrot.slane %v879_v26, 1  ;;  %v886_v55 = vadd.f32 %v885_v49, %v884_v18  ;;  %v893_v56 = vadd.f32 %v892_v13, %v891_v54  ;;  %v836_v44 = vmul.f32 %v2704_v10, %v2467_v50  ;;  %v1174_v54 = vld [vmem:[%s2983_s4] sm:$0xff] }
  0xdf   : > { %v2253_v13 = vmov 0.0  }
  0xe0   : > { %936 = vbcast.lane.b32.xlu1 %v863_v21, 264  ;;  %v881_v57 = vadd.f32 %v880_v14, %v879_v26  ;;  %v887_v45 = vrot.slane %v886_v55, 2  ;;  %v894_v58 = vrot.slane %v893_v56, 4  ;;  %v901_v15 = vsel %vm612_vm1, %v836_v44, 0.0  ;;  %2093 = vmatprep.subr.mxu0 %v2253_v13  ;;  %v554_v44 = vld [vmem:[%s2761_s19 + $0x8] sm:$0xff] }
  0xe1   : > { %v2709_v59 = vpop.eup %2226  ;;  %2098 = vmatprep.subr.mxu1 %v2253_v13  ;;  %2094 = vmatpush3.msra.mxu0 %v1174_v54  ;;  %v1297_v54 = vld [vmem:[%s2985_s6 + $0x18] sm:$0xff] }
  0xe2   : > { %946 = vbcast.lane.b32.xlu0 %v881_v57, 256  ;;  %v888_v27 = vadd.f32 %v887_v45, %v886_v55  ;;  %v895_v60 = vadd.f32 %v894_v58, %v893_v56  ;;  %v835_v61 = vmul.f32 %v2709_v59, %v2471_v51  ;;  %2095 = vmatprep.mubr.msk.f32.mxu0 %vm2254_vm5, %v2253_v13  ;;  %v556_v56 = vld [vmem:[%s2761_s19 + $0x18] sm:$0xff] }
  0xe3   : > { %2106 = vmatprep.mubr.msk.f32.mxu1 %vm2254_vm5, %v2253_v13  ;;  %2109 = vmatprep.subr.mxu0 %v2253_v13 }
  0xe4   : > { %943 = vbcast.lane.b32.xlu1 %v872_v19, 264  ;;  %v889_v63 = vrot.slane %v888_v27, 1  ;;  %v896_v4 = vrot.slane %v895_v60, 2  ;;  %v900_v7 = vsel %vm612_vm1, %v835_v61, 0.0  ;;  %v558_v61 = vld [vmem:[%s2761_s19 + $0x28] sm:$0xff]  ;;  %2099 = vmatpush3.msra.mxu1 %v1297_v54 }
  0xe5   : > { %v902_v50 = vadd.f32 %v901_v15, %v900_v7  ;;  %2100 = vmatprep.subr.mxu1 %v2253_v13 }
  0xe6   : > { %v890_v32 = vadd.f32 %v889_v63, %v888_v27  ;;  %v897_v2 = vadd.f32 %v896_v4, %v895_v60  ;;  %v557_v27 = vld [vmem:[%s2761_s19 + $0x20] sm:$0xff] }
  0xe7   : > { %v903_v3 = vrot.slane %v902_v50, 4 }
  0xe8   : > { %953 = vbcast.lane.b32.xlu0 %v890_v32, 256  ;;  %950 = vbcast.lane.b32.xlu1 %v881_v57, 264  ;;  %v898_v8 = vrot.slane %v897_v2, 1  ;;  %v553_v57 = vld [vmem:[%s2761_s19] sm:$0xff] }
  0xe9   : > { %v904_v12 = vadd.f32 %v903_v3, %v902_v50  ;;  %v559_v50 = vld [vmem:[%s2761_s19 + $0x30] sm:$0xff] }
  0xea   : > { %v899_v0 = vadd.f32 %v898_v8, %v897_v2 }
  0xeb   : > { %v905_v16 = vrot.slane %v904_v12, 2 }
  0xec   : > { %960 = vbcast.lane.b32.xlu0 %v899_v0, 256  ;;  %957 = vbcast.lane.b32.xlu1 %v890_v32, 264 }
  0xed   : > { %v906_v51 = vadd.f32 %v905_v16, %v904_v12  ;;  %v560_v12 = vld [vmem:[%s2761_s19 + $0x38] sm:$0xff] }
  0xef   : > { %v907_v17 = vrot.slane %v906_v51, 1 }
  0xf0   : > { %964 = vbcast.lane.b32.xlu1 %v899_v0, 264 }
  0xf1   : > { %v908_v33 = vadd.f32 %v907_v17, %v906_v51 }
  0xf3   : > { %967 = vbcast.lane.b32.xlu0 %v908_v33, 256 }
  0xf4   : > { %971 = vbcast.lane.b32.xlu1 %v908_v33, 264 }
 0x146   : > { %v923_v22 = vpop.permute.xlu1 %922  ;;  %v919_v24 = vpop.permute.xlu0 %918 }
 0x147   : > { %v990_v43 = vmul.f32 %v2596_v48, %v923_v22  ;;  %v989_v28 = vmul.f32 %v2573_v35, %v919_v24  ;;  %v561_v24 = vld [vmem:[%s2761_s19 + $0x40] sm:$0xff] }
 0x149   : > { %1012 = vperm.xlu1 %2163, %v990_v43   ;;  %1007 = vperm.xlu0 %2162, %v989_v28  }
 0x14a   : > { %v926_v41 = vpop.permute.xlu1 %925 }
 0x14b   : > { %v991_v29 = vmul.f32 %v2568_v5, %v926_v41  ;;  %v933_v21 = vpop.permute.xlu0 %932 }
 0x14c   : > { %v993_v31 = vmul.f32 %v2618_v62, %v933_v21 }
 0x14d   : > { %1017 = vperm.xlu1 %2163, %v991_v29  }
 0x14e   : > { %v930_v52 = vpop.permute.xlu1 %929 }
 0x14f   : > { %v992_v34 = vmul.f32 %v2590_v47, %v930_v52 }
 0x150   : > { %v940_v6 = vpop.permute.xlu0 %939 }
 0x151   : > { %1022 = vperm.xlu0 %2162, %v992_v34   ;;  %1027 = vperm.xlu1 %2163, %v993_v31   ;;  %v995_v48 = vmul.f32 %v2642_v30, %v940_v6  ;;  %v562_v31 = vld [vmem:[%s2761_s19 + $0x48] sm:$0xff] }
 0x152   : > { %v937_v37 = vpop.permute.xlu1 %936 }
 0x153   : > { %v994_v35 = vmul.f32 %v2612_v11, %v937_v37 }
 0x154   : > { %v947_v42 = vpop.permute.xlu0 %946 }
 0x155   : > { %1032 = vperm.xlu0 %2162, %v994_v35   ;;  %1037 = vperm.xlu1 %2163, %v995_v48   ;;  %v997_v46 = vmul.f32 %v2663_v53, %v947_v42  ;;  %v563_v42 = vld [vmem:[%s2761_s19 + $0x50] sm:$0xff] }
 0x156   : > { %v944_v5 = vpop.permute.xlu1 %943 }
 0x157   : > { %v996_v62 = vmul.f32 %v2637_v25, %v944_v5 }
 0x159   : > { %1042 = vperm.xlu0 %2162, %v996_v62   ;;  %1047 = vperm.xlu1 %2163, %v997_v46  }
 0x15a   : > { %v954_v47 = vpop.permute.xlu0 %953  ;;  %v951_v18 = vpop.permute.xlu1 %950 }
 0x15b   : > { %v999_v38 = vmul.f32 %v2687_v20, %v954_v47  ;;  %v998_v39 = vmul.f32 %v2659_v9, %v951_v18 }
 0x15d   : > { %1052 = vperm.xlu0 %2162, %v998_v39   ;;  %1057 = vperm.xlu1 %2163, %v999_v38   ;;  %v564_v38 = vld [vmem:[%s2761_s19 + $0x58] sm:$0xff] }
 0x15e   : > { %v961_v11 = vpop.permute.xlu0 %960  ;;  %v958_v30 = vpop.permute.xlu1 %957 }
 0x15f   : > { %v1001_v19 = vmul.f32 %v2697_v40, %v961_v11  ;;  %v1000_v26 = vmul.f32 %v2685_v23, %v958_v30  ;;  %v1276_v40 = vld [vmem:[%s539_s26] sm:$0xff] }
 0x161   : > { %1062 = vperm.xlu0 %2162, %v1000_v26   ;;  %1067 = vperm.xlu1 %2163, %v1001_v19  }
 0x162   : > { %v965_v25 = vpop.permute.xlu1 %964 }
 0x163   : > { %v1002_v53 = vmul.f32 %v2694_v36, %v965_v25  ;;  %v1275_v36 = vld [vmem:[%s535_s23] sm:$0xff] }
 0x165   : > { %v968_v9 = vpop.permute.xlu0 %967  ;;  %1072 = vperm.xlu0 %2162, %v1002_v53  }
 0x166   : > { %v1003_v20 = vmul.f32 %v2709_v59, %v968_v9  ;;  %v972_v49 = vpop.permute.xlu1 %971  ;;  %v555_v59 = vld [vmem:[%s2761_s19 + $0x10] sm:$0xff] }
 0x167   : > { %v1004_v23 = vmul.f32 %v2704_v10, %v972_v49 }
 0x168   : > { %1077 = vperm.xlu1 %2163, %v1003_v20   ;;  %v565_v20 = vld [vmem:[%s2761_s19 + $0x60] sm:$0xff] }
 0x169   : > { %1082 = vperm.xlu0 %2162, %v1004_v23  }
 0x16c   : > { %1280 = vperm.xlu1 %2163, %v1275_v36  }
 0x16d   : > { %1381 = vperm.xlu0 %2162, %v1276_v40   ;;  %v566_v40 = vld [vmem:[%s2761_s19 + $0x68] sm:$0xff] }
 0x1c4   : > { %v1013_v10 = vpop.permute.xlu1 %1012  ;;  %v1008_v14 = vpop.permute.xlu0 %1007 }
 0x1c5   : > { %v1086_v15 = vmul.f32 %v1013_v10, %v554_v44  ;;  %v1085_v63 = vmul.f32 %v1008_v14, %v553_v57  ;;  %v1296_v10 = vld [vmem:[%s2985_s6 + $0x10] sm:$0xff] }
 0x1c6   : > { %2101 = vmatpush3.msra.mxu1 %v1296_v10 }
 0x1c7   : > { %v1103_v0 = vsel %vm1101_vm6, %v1086_v15, 0.0  ;;  %v1102_v16 = vsel %vm1101_vm6, %v1085_v63, 0.0  ;;  %2102 = vmatprep.subr.mxu1 %v2253_v13 }
 0x1c8   : > { %v1018_v55 = vpop.permute.xlu1 %1017  ;;  %v1104_v21 = vadd.f32 %v1103_v0, %v1102_v16 }
 0x1c9   : > { %v1087_v4 = vmul.f32 %v1018_v55, %v555_v59 }
 0x1ca   : > { %v1105_v47 = vrot.slane %v1104_v21, 4 }
 0x1cb   : > { %v1111_v33 = vsel %vm1101_vm6, %v1087_v4, 0.0  ;;  %v568_v4 = vld [vmem:[%s2761_s19 + $0x78] sm:$0xff] }
 0x1cc   : > { %v1028_v45 = vpop.permute.xlu1 %1027  ;;  %v1023_v58 = vpop.permute.xlu0 %1022  ;;  %v1106_v14 = vadd.f32 %v1105_v47, %v1104_v21  ;;  %v2043_v21 = vld [vmem:[%s2984_s5 + $0x1] ss:$0 sm:$0xff] }
 0x1cd   : > { %v1088_v60 = vmul.f32 %v1023_v58, %v556_v56  ;;  %v1089_v2 = vmul.f32 %v1028_v45, %v557_v27 }
 0x1cf   : > { %v1112_v8 = vsel %vm1101_vm6, %v1088_v60, 0.0  ;;  %v1120_v28 = vsel %vm1101_vm6, %v1089_v2, 0.0  ;;  %v567_v60 = vld [vmem:[%s2761_s19 + $0x70] sm:$0xff] }
 0x1d0   : > { %v1038_v7 = vpop.permute.xlu1 %1037  ;;  %v1033_v32 = vpop.permute.xlu0 %1032  ;;  %v1113_v41 = vadd.f32 %v1112_v8, %v1111_v33  ;;  %v2042_v33 = vld [vmem:[%s2984_s5] ss:$0 sm:$0xff] }
 0x1d1   : > { %v1090_v3 = vmul.f32 %v1033_v32, %v558_v61  ;;  %v1091_v51 = vmul.f32 %v1038_v7, %v559_v50  ;;  %v1107_v7 = vrot.slane %v1106_v14, 2 }
 0x1d2   : > { %v1114_v46 = vrot.slane %v1113_v41, 4 }
 0x1d3   : > { %v1121_v17 = vsel %vm1101_vm6, %v1090_v3, 0.0  ;;  %v1129_v34 = vsel %vm1101_vm6, %v1091_v51, 0.0 }
 0x1d4   : > { %v1048_v22 = vpop.permute.xlu1 %1047  ;;  %v1043_v43 = vpop.permute.xlu0 %1042  ;;  %v1122_v52 = vadd.f32 %v1121_v17, %v1120_v28  ;;  %v1115_v53 = vadd.f32 %v1114_v46, %v1113_v41  ;;  %v1108_v28 = vadd.f32 %v1107_v7, %v1106_v14 }
 0x1d5   : > { %v1092_v29 = vmul.f32 %v1043_v43, %v560_v12  ;;  %v1093_v6 = vmul.f32 %v1048_v22, %v561_v24 }
 0x1d6   : > { %v1123_v18 = vrot.slane %v1122_v52, 4  ;;  %v1116_v27 = vrot.slane %v1115_v53, 2  ;;  %v1109_v47 = vrot.slane %v1108_v28, 1 }
 0x1d7   : > { %v1130_v37 = vsel %vm1101_vm6, %v1092_v29, 0.0  ;;  %v1138_v39 = vsel %vm1101_vm6, %v1093_v6, 0.0 }
 0x1d8   : > { %v1131_v48 = vadd.f32 %v1130_v37, %v1129_v34  ;;  %v1058_v35 = vpop.permute.xlu1 %1057  ;;  %v1053_v5 = vpop.permute.xlu0 %1052  ;;  %v1124_v23 = vadd.f32 %v1123_v18, %v1122_v52  ;;  %v1117_v51 = vadd.f32 %v1116_v27, %v1115_v53 }
 0x1d9   : > { %v1094_v62 = vmul.f32 %v1053_v5, %v562_v31  ;;  %v1095_v30 = vmul.f32 %v1058_v35, %v563_v42 }
 0x1da   : > { %v1132_v11 = vrot.slane %v1131_v48, 4  ;;  %v1125_v15 = vrot.slane %v1124_v23, 2 }
 0x1db   : > { %v1139_v19 = vsel %vm1101_vm6, %v1094_v62, 0.0  ;;  %v1147_v56 = vsel %vm1101_vm6, %v1095_v30, 0.0 }
 0x1dc   : > { %v1140_v26 = vadd.f32 %v1139_v19, %v1138_v39  ;;  %v1063_v25 = vpop.permute.xlu0 %1062  ;;  %v1068_v9 = vpop.permute.xlu1 %1067  ;;  %v1133_v55 = vadd.f32 %v1132_v11, %v1131_v48  ;;  %v1126_v24 = vadd.f32 %v1125_v15, %v1124_v23  ;;  %v1118_v48 = vrot.slane %v1117_v51, 1  ;;  %v1175_v15 = vld [vmem:[%s2983_s4 + $0x8] sm:$0x1] }
 0x1dd   : > { %v1096_v49 = vmul.f32 %v1063_v25, %v564_v38  ;;  %v1097_v45 = vmul.f32 %v1068_v9, %v565_v20  ;;  %v1110_v9 = vadd.f32 %v1109_v47, %v1108_v28  ;;  %v1596_v47 = vld [vmem:[%s2988_s9 + $0x8] sm:$0xff] }
 0x1de   : > { %v1141_v36 = vrot.slane %v1140_v26, 4  ;;  %v1134_v50 = vrot.slane %v1133_v55, 2  ;;  %v1127_v46 = vrot.slane %v1126_v24, 1  ;;  %v1119_v30 = vadd.f32 %v1118_v48, %v1117_v51  ;;  %v1514_v48 = vld [vmem:[%s2987_s8 + $0x10] sm:$0xff] }
 0x1df   : > { %v1148_v44 = vsel %vm1101_vm6, %v1096_v49, 0.0  ;;  %v1156_v8 = vsel %vm1101_vm6, %v1097_v45, 0.0 }
 0x1e0   : > { %v1142_v57 = vadd.f32 %v1141_v36, %v1140_v26  ;;  %v1149_v58 = vadd.f32 %v1148_v44, %v1147_v56  ;;  %v1073_v59 = vpop.permute.xlu0 %1072  ;;  %v1135_v41 = vadd.f32 %v1134_v50, %v1133_v55  ;;  %v1128_v53 = vadd.f32 %v1127_v46, %v1126_v24  ;;  %v2047_v24 = vld [vmem:[%s2985_s6 + $0x22] ss:$0 sm:$0xff]  ;;  %v1597_v46 = vld [vmem:[%s2988_s9 + $0x10] sm:$0xff] }
 0x1e1   : > { %v1098_v61 = vmul.f32 %v1073_v59, %v566_v40  ;;  %v1190_v40 = vsel %vm1189_vm7, %v1119_v30, %v1110_v9  ;;  %v2050_v30 = vld [vmem:[%s2986_s7 + $0x10] ss:$0 sm:$0xff] }
 0x1e2   : > { %v1150_v63 = vrot.slane %v1149_v58, 4  ;;  %v1143_v3 = vrot.slane %v1142_v57, 2  ;;  %v1136_v18 = vrot.slane %v1135_v41, 1  ;;  %v1192_v14 = vsel %vm1191_vm8, %v1128_v53, %v1190_v40  ;;  %v1680_v40 = vld [vmem:[%s2989_s10 + $0x8] sm:$0xff] }
 0x1e3   : > { %v1078_v32 = vpop.permute.xlu1 %1077  ;;  %v1157_v2 = vsel %vm1101_vm6, %v1098_v61, 0.0  ;;  %v1294_v61 = vld [vmem:[%s2985_s6] sm:$0xff] }
 0x1e4   : > { %v1151_v12 = vadd.f32 %v1150_v63, %v1149_v58  ;;  %v1099_v0 = vmul.f32 %v1078_v32, %v567_v60  ;;  %v1083_v16 = vpop.permute.xlu0 %1082  ;;  %v1158_v17 = vadd.f32 %v1157_v2, %v1156_v8  ;;  %v1144_v34 = vadd.f32 %v1143_v3, %v1142_v57  ;;  %v1295_v60 = vld [vmem:[%s2985_s6 + $0x8] sm:$0xff]  ;;  %v1424_v8 = vld [vmem:[%s2986_s7] sm:$0xff] }
 0x1e5   : > { %v1100_v22 = vmul.f32 %v1083_v16, %v568_v4  ;;  %v1137_v20 = vadd.f32 %v1136_v18, %v1135_v41  ;;  %2103 = vmatpush3.msra.mxu1 %v1295_v60  ;;  %v1176_v63 = vmul.f32 16.0, %v1175_v15  ;;  %v1179_v4 = vsub.s32 0, %v2343_v1  ;;  %v1425_v3 = vld [vmem:[%s2986_s7 + $0x8] sm:$0xff]  ;;  %v1595_v18 = vld [vmem:[%s2988_s9] sm:$0xff] }
 0x1e6   : > { %v1152_v43 = vrot.slane %v1151_v12, 2  ;;  %v1159_v29 = vrot.slane %v1158_v17, 4  ;;  %v1165_v6 = vsel %vm1101_vm6, %v1099_v0, 0.0  ;;  %v1145_v11 = vrot.slane %v1144_v34, 1  ;;  %2104 = vmatprep.subr.mxu1 %v2253_v13  ;;  %v2046_v0 = vld [vmem:[%s2985_s6 + $0x21] ss:$0 sm:$0xff] }
 0x1e7   : > { %v2807_v52 = vpop.permute.xlu1 %1280  ;;  %v1166_v31 = vsel %vm1101_vm6, %v1100_v22, 0.0  ;;  %v1194_v44 = vsel %vm1193_vm9, %v1137_v20, %v1192_v14  ;;  %2105 = vmatpush3.msra.mxu1 %v1294_v61  ;;  %v1180_v7 = vrot.slane %v1176_v63, %v1179_v4  ;;  %v1768_v14 = vld [vmem:[%s2990_s11 + $0x30] sm:$0xff] }
 0x1e8   : > { %v1287_v37 = vmul.f32 %v2042_v33, %v2807_v52  ;;  %v1153_v35 = vadd.f32 %v1152_v43, %v1151_v12  ;;  %v1160_v42 = vadd.f32 %v1159_v29, %v1158_v17  ;;  %v1167_v5 = vadd.f32 %v1166_v31, %v1165_v6  ;;  %2127 = vmatprep.subr.mxu1 %v2253_v13  ;;  %v2044_v12 = vld [vmem:[%s2985_s6 + $0x20] ss:$0 sm:$0xff]  ;;  %v1382_v16 = vpop.permute.xlu0 %1381 }
 0x1e9   : > { %v1146_v36 = vadd.f32 %v1145_v11, %v1144_v34  ;;  %v1303_v51 = vmul.f32 %v2044_v12, %v2807_v52  ;;  %v1388_v33 = vmul.f32 %v2046_v0, %v1382_v16 }
 0x1ea   : > { %v2812_v62 = vadd.f32 %v2043_v21, %v1287_v37  ;;  %v1161_v38 = vrot.slane %v1160_v42, 2  ;;  %v1168_v39 = vrot.slane %v1167_v5, 4  ;;  %v1154_v19 = vrot.slane %v1153_v35, 1  ;;  %v1515_v37 = vld [vmem:[%s2987_s8 + $0x18] sm:$0xff] }
 0x1eb   : > { %v1196_v57 = vsel %vm1195_vm10, %v1146_v36, %v1194_v44  ;;  %v1681_v36 = vld [vmem:[%s2989_s10 + $0x10] sm:$0xff] }
 0x1ec   : > { %1407 = vrot.lane.b32.xlu0 %v2812_v62, %s2255_s27  ;;  %v1162_v26 = vadd.f32 %v1161_v38, %v1160_v42  ;;  %v1169_v25 = vadd.f32 %v1168_v39, %v1167_v5  ;;  %v1155_v54 = vadd.f32 %v1154_v19, %v1153_v35  ;;  %v1513_v35 = vld [vmem:[%s2987_s8 + $0x8] sm:$0xff]  ;;  %v1512_v42 = vld [vmem:[%s2987_s8] sm:$0xff]  ;;  %v1598_v5 = vld [vmem:[%s2988_s9 + $0x18] sm:$0xff]  ;;  %v2049_v38 = vmul.f32 -1.442695, %v2812_v62 }
 0x1ed   : > { %v1431_v19 = vmul.f32 %v2050_v30, %v1382_v16  ;;  %v1682_v62 = vld [vmem:[%s2989_s10 + $0x18] sm:$0xff] }
 0x1ee   : > { %v1163_v49 = vrot.slane %v1162_v26, 1  ;;  %v1170_v23 = vrot.slane %v1169_v25, 2  ;;  %v1198_v58 = vsel %vm1197_vm11, %v1155_v54, %v1196_v57  ;;  %v1679_v54 = vld [vmem:[%s2989_s10] sm:$0xff] }
 0x1ef   : > { %v1766_v57 = vld [vmem:[%s2990_s11 + $0x20] sm:$0xff] }
 0x1f0   : > { %v1171_v10 = vadd.f32 %v1170_v23, %v1169_v25  ;;  %v1164_v55 = vadd.f32 %v1163_v49, %v1162_v26  ;;  %v2052_v25 = vld [vmem:[%s2986_s7 + $0x11] ss:$0 sm:$0xff] }
 0x1f2   : > { %v1172_v56 = vrot.slane %v1171_v10, 1  ;;  %v1200_v59 = vsel %vm1199_vm12, %v1164_v55, %v1198_v58  ;;  %v1764_v58 = vld [vmem:[%s2990_s11 + $0x10] sm:$0xff] }
 0x1f4   : > { %v1173_v45 = vadd.f32 %v1172_v56, %v1171_v10  ;;  %v1769_v10 = vld [vmem:[%s2990_s11 + $0x38] sm:$0xff]  ;;  %v1767_v56 = vld [vmem:[%s2990_s11 + $0x28] sm:$0xff] }
 0x1f6   : > { %v1202_v27 = vsel %vm1201_vm13, %v1173_v45, %v1200_v59  ;;  %v1765_v45 = vld [vmem:[%s2990_s11 + $0x18] sm:$0xff]  ;;  %v1762_v59 = vld [vmem:[%s2990_s11] sm:$0xff] }
 0x1f7   : > { %2096 = vmatmul.mubr.msk.f32.vlgmr.msra.gmra.mxu0 %vm1101_vm6, %v1202_v27  ;;  %v2053_v27 = vld [vmem:[%s2987_s8 + $0x20] ss:$0 sm:$0xff] }
 0x1f8   : > { %2113 = vmatprep.mubr.msk.f32.mxu0 %vm2254_vm5, %v2253_v13  ;;  %2110 = vmatpush3.msra.mxu0 %v1425_v3 }
 0x1f9   : > { %2111 = vmatprep.subr.mxu0 %v2253_v13 }
 0x1fa   : > { %2112 = vmatpush3.msra.mxu0 %v1424_v8  ;;  %v2057_v8 = vld [vmem:[%s2989_s10 + $0x20] ss:$0 sm:$0xff] }
 0x1fb   : > { %2116 = vmatprep.subr.mxu0 %v2253_v13 }
 0x25e   : > { %v1408_v6 = vpop.permute.xlu0 %1407 }
 0x2b7   : > { %v1271_v50 = vpop.f32.mrf.mxu0 }
 0x2b8   : > { %v1272_v32 = vadd.f32 %v1271_v50, %v1180_v7  ;;  %v2055_v7 = vld [vmem:[%s2988_s9 + $0x20] ss:$0 sm:$0xff] }
 0x2b9   : > { %v2097_v2 = vpop.f32.mrf.mxu0 }
 0x2ba   : > { %2107 = vmatmul.mubr.msk.f32.vlgmr.msra.gmra.mxu1 %vm1304_vm14, %v1272_v32 }
 0x2bb   : > { %2135 = vmatprep.mubr.msk.f32.mxu1 %vm2254_vm5, %v2253_v13  ;;  %2128 = vmatpush3.msra.mxu1 %v1598_v5 }
 0x2bc   : > { %2129 = vmatprep.subr.mxu1 %v2253_v13 }
 0x2bd   : > { %2130 = vmatpush3.msra.mxu1 %v1597_v46 }
 0x2be   : > { %2131 = vmatprep.subr.mxu1 %v2253_v13 }
 0x2bf   : > { %2132 = vmatpush3.msra.mxu1 %v1596_v47 }
 0x2c0   : > { %2133 = vmatprep.subr.mxu1 %v2253_v13 }
 0x2c1   : > { %2134 = vmatpush3.msra.mxu1 %v1595_v18 }
 0x2c2   : > { %1810 = vmatprep.subr.mxu1 %v1769_v10 }
 0x37a   : > { %v1374_v17 = vpop.f32.mrf.mxu1 }
 0x37b   : > { %v1375_v22 = vadd.f32 %v1374_v17, %v1303_v51  ;;  %v2059_v51 = vld [vmem:[%s2990_s11 + $0x40] ss:$8 sm:$0x3]  ;;  %v1779_v17 = vsub.s32 1, %v2343_v1 }
 0x37c   : > { %v2108_v43 = vpop.f32.mrf.mxu1 }
 0x37d   : > { %v1389_v28 = vadd.f32 %v1388_v33, %v1375_v22  ;;  %v1776_v33 = vrot.slane %v2059_v51, %v1179_v4  ;;  %v1780_v22 = vrot.slane %v2059_v51, %v1779_v17 }
 0x37f   : > { %v1395_v41 = vadd.f32 %v2047_v24, %v1389_v28 }
 0x381   : > { %v1396_v29 = vmax.f32 %v1395_v41, 0.0 }
 0x383   : > { %v2048_v21 = vmul.f32 -1.442695, %v1396_v29  ;;  %2114 = vmatmul.mubr.msk.f32.vlgmr.msra.gmra.mxu0 %vm612_vm1, %v1396_v29  ;;  %1397 = vst.msk [vmem:[%s2858_s21] sm:$0xff] %vm612_vm1, %v1396_v29  ;;  %vm1422_vm1 = vcmask 523648  }
 0x384   : > { %2124 = vmatprep.mubr.msk.f32.mxu0 %vm2254_vm5, %v2253_v13  ;;  %2117 = vmatpush3.msra.mxu0 %v1515_v37 }
 0x385   : > { %2228 = vpow2.f32 %v2048_v21  ;;  %2118 = vmatprep.subr.mxu0 %v2253_v13 }
 0x386   : > { %2119 = vmatpush3.msra.mxu0 %v1514_v48 }
 0x387   : > { %2120 = vmatprep.subr.mxu0 %v2253_v13 }
 0x388   : > { %2121 = vmatpush3.msra.mxu0 %v1513_v35 }
 0x389   : > { %2122 = vmatprep.subr.mxu0 %v2253_v13 }
 0x38a   : > { %2123 = vmatpush3.msra.mxu0 %v1512_v42 }
 0x38b   : > { %2138 = vmatprep.subr.mxu0 %v2253_v13 }
 0x392   : > { %v2229_v52 = vpop.eup %2228 }
 0x393   : > { %v1401_v31 = vadd.f32 1.0, %v2229_v52 }
 0x395   : > { %2230 = vrcp.f32 %v1401_v31 }
 0x396   : > { %2232 = vpow2.f32 %v2049_v38 }
 0x3a2   : > { %v2231_v34 = vpop.eup %2230 }
 0x3a3   : > { %1405 = vst.msk [vmem:[%s2858_s21] sm:$0xff] %vm1404_vm15, %v2231_v34  ;;  %v2233_v39 = vpop.eup %2232 }
 0x3a4   : > { %1411 = vst.msk [vmem:[%s2858_s21] sm:$0xff] %vm1410_vm0, %v1408_v6  ;;  %v1415_v11 = vadd.f32 1.0, %v2233_v39 }
 0x3a6   : > { %2234 = vrcp.f32 %v1415_v11 }
 0x3b3   : > { %v2235_v23 = vpop.eup %2234 }
 0x443   : > { %v1501_v26 = vpop.f32.mrf.mxu0 }
 0x444   : > { %v1502_v53 = vadd.f32 %v1501_v26, %v1431_v19 }
 0x445   : > { %v2115_v9 = vpop.f32.mrf.mxu0 }
 0x446   : > { %v1510_v20 = vadd.f32 %v2052_v25, %v1502_v53 }
 0x448   : > { %v1511_v49 = vmax.f32 %v1510_v20, 0.0 }
 0x44a   : > { %1604 = vrot.lane.b32.xlu1 %v1511_v49, %s2256_s22  ;;  %2125 = vmatmul.mubr.msk.f32.vlgmr.msra.gmra.mxu0 %vm1304_vm14, %v1511_v49 }
 0x44b   : > { %2139 = vmatpush3.msra.mxu0 %v1682_v62  ;;  %2146 = vmatprep.mubr.msk.f32.mxu0 %vm2254_vm5, %v2253_v13 }
 0x44c   : > { %2140 = vmatprep.subr.mxu0 %v2253_v13 }
 0x44d   : > { %2141 = vmatpush3.msra.mxu0 %v1681_v36 }
 0x44e   : > { %1419 = vrot.lane.b32.xlu1 %v2235_v23, %s2255_s27  ;;  %2142 = vmatprep.subr.mxu0 %v2253_v13 }
 0x44f   : > { %2143 = vmatpush3.msra.mxu0 %v1680_v40 }
 0x450   : > { %2144 = vmatprep.subr.mxu0 %v2253_v13 }
 0x451   : > { %2145 = vmatpush3.msra.mxu0 %v1679_v54 }
 0x4bc   : > { %v1605_v55 = vpop.permute.xlu1 %1604 }
 0x4bd   : > { %2136 = vmatmul.mubr.msk.f32.vlgmr.msra.gmra.mxu1 %vm1304_vm14, %v1605_v55 }
 0x4be   : > { %1811 = vmatpush1.msra.mxu1 %v1768_v14  ;;  %1850 = vmatprep.mubr.f32.mxu1 %v2253_v13  ;;  %v1763_v13 = vld [vmem:[%s2990_s11 + $0x8] sm:$0xff] }
 0x4bf   : > { %1812 = vmatprep.subr.mxu1 %v1767_v56 }
 0x4c0   : > { %v1420_v44 = vpop.permute.xlu1 %1419  ;;  %1813 = vmatpush1.msra.mxu1 %v1766_v57 }
 0x4c1   : > { %1423 = vst.msk [vmem:[%s2858_s21] sm:$0xff] %vm1422_vm1, %v1420_v44  ;;  %1814 = vmatprep.subr.mxu1 %v1765_v45 }
 0x4c2   : > { %1815 = vmatpush1.msra.mxu1 %v1764_v58 }
 0x4c3   : > { %1816 = vmatprep.subr.mxu1 %v1763_v13 }
 0x4c4   : > { %1817 = vmatpush1.msra.mxu1 %v1762_v59 }
 0x50a   : > { %v1590_v60 = vpop.f32.mrf.mxu0 }
 0x50b   : > { %v1591_v61 = vadd.f32 %v2053_v27, %v1590_v60 }
 0x50c   : > { %v2126_v15 = vpop.f32.mrf.mxu0 }
 0x50d   : > { %v1594_v63 = vmax.f32 %v1591_v61, 0.0 }
 0x50f   : > { %2147 = vmatmul.mubr.msk.f32.vlgmr.msra.gmra.mxu0 %vm1304_vm14, %v1594_v63 }
 0x57d   : > { %v1674_v50 = vpop.f32.mrf.mxu1 }
 0x57e   : > { %v1675_v32 = vadd.f32 %v2055_v7, %v1674_v50 }
 0x57f   : > { %v2137_v2 = vpop.f32.mrf.mxu1 }
 0x580   : > { %v1678_v3 = vmax.f32 %v1675_v32, 0.0 }
 0x582   : > { %2060 = vmatmul.mubr.msk.f32.vlgmr.msra.gmra.mxu1 %vm1304_vm14, %v1678_v3 }
 0x5cf   : > { %v1757_v12 = vpop.f32.mrf.mxu0 }
 0x5d0   : > { %v1758_v0 = vadd.f32 %v2057_v8, %v1757_v12 }
 0x5d1   : > { %v2148_v16 = vpop.f32.mrf.mxu0 }
 0x5d2   : > { %1761 = vst [vmem:[%s547_s17] sm:$0xff] %v1758_v0 }
 0x642   : > { %v1852_v24 = vpop.f32.mrf.mxu1 }
 0x643   : > { %v1853_v43 = vadd.f32 %v1852_v24, %v1776_v33 }
 0x644   : > { %v1854_v28 = vpop.f32.mrf.mxu1 }
 0x645   : > { %v2061_v41 = vmul.f32 -1.442695, %v1853_v43  ;;  %v1855_v29 = vadd.f32 %v1854_v28, %v1780_v22 }
 0x647   : > { %2236 = vpow2.f32 %v2061_v41  ;;  %v2062_v21 = vmul.f32 -1.442695, %v1855_v29 }
 0x649   : > { %2238 = vpow2.f32 %v2062_v21 }
 0x654   : > { %v2237_v52 = vpop.eup %2236 }
 0x655   : > { %v1863_v31 = vadd.f32 1.0, %v2237_v52 }
 0x656   : > { %v2239_v34 = vpop.eup %2238 }
 0x657   : > { %2240 = vrcp.f32 %v1863_v31  ;;  %v1864_v6 = vadd.f32 1.0, %v2239_v34 }
 0x659   : > { %2242 = vrcp.f32 %v1864_v6 }
 0x664   : > { %v2241_v1 = vpop.eup %2240 }
 0x665   : > { %1869 = vst [vmem:[%s552_s15] sm:$0xff] %v2241_v1 }
 0x666   : > { %v2243_v4 = vpop.eup %2242 }
 0x667   : > { %1870 = vst [vmem:[%s552_s15 + $0x8] sm:$0xff] %v2243_v4 }
 0x668 PF: > { %s25_s29 = sadd.s32 1, %s2250_s29  }
 0x669   : > { %p22_p5 = scmp.ge.s32.totalorder %s25_s29, 5  }
 0x66b   :  { %24 = sbr.rel (!%p22_p5) target bundleno = 1 (0x1), region = 132 }

</bundles_post_ra>
